<compile_context>
chip_gen: v5e
topology: v5e:2x2
jax: 0.10.0
libtpu: 0.0.40
codegen_flags: <defaults>
</compile_context>

<pallas_src>
import functools

import jax
import jax.numpy as jnp
from jax.experimental import pallas as pl
from jax.experimental.pallas import tpu as pltpu


# ---------------------------------------------------------------------------
# Tile selection: full-dim block when small (always legal, no padding),
# otherwise the largest aligned divisor <= pref.
# ---------------------------------------------------------------------------
def _pick_tile(dim, pref, align):
    if dim <= pref:
        return dim
    t = (pref // align) * align
    while t >= align:
        if dim % t == 0:
            return t
        t -= align
    return dim


def _apply_act(y, act):
    if act == "gelu":
        # TODO(synk): timm uses erf-GELU; tanh approximation (EUP-friendly)
        # differs by <1e-3 and lowers cleanly in Mosaic.
        return jax.nn.gelu(y, approximate=True)
    return y


# ---------------------------------------------------------------------------
# Pallas kernel 1: matmul with fused bias (+ residual) (+ GELU) epilogue.
# bf16 MXU inputs, f32 accumulation/epilogue.  Single K block -> no scratch.
# ---------------------------------------------------------------------------
def _mm_kernel(a_ref, b_ref, bias_ref, o_ref, *, act):
    a = a_ref[...].astype(jnp.bfloat16)
    y = jnp.dot(a, b_ref[...], preferred_element_type=jnp.float32)
    y = y + bias_ref[...]
    o_ref[...] = _apply_act(y, act).astype(o_ref.dtype)


def _mm_res_kernel(a_ref, b_ref, bias_ref, res_ref, o_ref, *, act):
    a = a_ref[...].astype(jnp.bfloat16)
    y = jnp.dot(a, b_ref[...], preferred_element_type=jnp.float32)
    y = y + bias_ref[...] + res_ref[...]
    o_ref[...] = _apply_act(y, act).astype(o_ref.dtype)


def matmul_bias(a, b, bias, residual=None, act="none",
                tm_pref=256, tn_pref=512):
    """out = act(a @ b + bias [+ residual]).  a:(M,K) f32, b:(K,N) weights."""
    M, K = a.shape
    K2, N = b.shape
    assert K == K2
    tm = _pick_tile(M, tm_pref, 8)
    tn = _pick_tile(N, tn_pref, 128)
    grid = (M // tm, N // tn)
    bias2 = bias.reshape(1, N).astype(jnp.float32)

    in_specs = [
        pl.BlockSpec((tm, K), lambda i, j: (i, 0)),
        pl.BlockSpec((K, tn), lambda i, j: (0, j)),
        pl.BlockSpec((1, tn), lambda i, j: (0, j)),
    ]
    args = [a, b.astype(jnp.bfloat16), bias2]
    if residual is not None:
        in_specs.append(pl.BlockSpec((tm, tn), lambda i, j: (i, j)))
        args.append(residual)
        kernel = functools.partial(_mm_res_kernel, act=act)
    else:
        kernel = functools.partial(_mm_kernel, act=act)

    return pl.pallas_call(
        kernel,
        out_shape=jax.ShapeDtypeStruct((M, N), jnp.float32),
        grid_spec=pltpu.PrefetchScalarGridSpec(
            num_scalar_prefetch=0,
            grid=grid,
            in_specs=in_specs,
            out_specs=pl.BlockSpec((tm, tn), lambda i, j: (i, j)),
        ),
        compiler_params=pltpu.CompilerParams(
            dimension_semantics=("parallel", "parallel")),
    )(*args)


# ---------------------------------------------------------------------------
# Pallas kernel 2: LayerNorm over the feature (last) axis, row-tiled.
# ---------------------------------------------------------------------------
def _ln_kernel(x_ref, g_ref, b_ref, o_ref, *, eps):
    x = x_ref[...].astype(jnp.float32)
    mean = jnp.mean(x, axis=-1, keepdims=True)
    xc = x - mean
    var = jnp.mean(xc * xc, axis=-1, keepdims=True)
    inv = jax.lax.rsqrt(var + eps)
    o_ref[...] = (xc * inv * g_ref[...] + b_ref[...]).astype(o_ref.dtype)


def layernorm(x, gamma, beta, eps=1e-6, tm_pref=512):
    M, D = x.shape
    tm = _pick_tile(M, tm_pref, 8)
    return pl.pallas_call(
        functools.partial(_ln_kernel, eps=eps),
        out_shape=jax.ShapeDtypeStruct((M, D), jnp.float32),
        grid_spec=pltpu.PrefetchScalarGridSpec(
            num_scalar_prefetch=0,
            grid=(M // tm,),
            in_specs=[
                pl.BlockSpec((tm, D), lambda i: (i, 0)),
                pl.BlockSpec((1, D), lambda i: (0, 0)),
                pl.BlockSpec((1, D), lambda i: (0, 0)),
            ],
            out_specs=pl.BlockSpec((tm, D), lambda i: (i, 0)),
        ),
        compiler_params=pltpu.CompilerParams(
            dimension_semantics=("parallel",)),
    )(x, gamma.reshape(1, D), beta.reshape(1, D))


# ---------------------------------------------------------------------------
# Pallas kernel 3: per-(batch*head) softmax attention.  S and Dh stay whole
# (full-dim blocks) -- comfortably within VMEM even at ViT-base scale.
# ---------------------------------------------------------------------------
def _attn_kernel(q_ref, k_ref, v_ref, o_ref, *, scale):
    s = jnp.einsum('bqd,bkd->bqk', q_ref[...], k_ref[...],
                   preferred_element_type=jnp.float32) * scale
    m = jnp.max(s, axis=-1, keepdims=True)
    p = jnp.exp(s - m)
    l = jnp.sum(p, axis=-1, keepdims=True)
    o = jnp.einsum('bqk,bkd->bqd', p.astype(v_ref.dtype), v_ref[...],
                   preferred_element_type=jnp.float32)
    o_ref[...] = (o / l).astype(o_ref.dtype)


def attention(q, k, v, scale):
    BH, S, Dh = q.shape
    spec = pl.BlockSpec((1, S, Dh), lambda i: (i, 0, 0))
    return pl.pallas_call(
        functools.partial(_attn_kernel, scale=scale),
        out_shape=jax.ShapeDtypeStruct((BH, S, Dh), jnp.float32),
        grid_spec=pltpu.PrefetchScalarGridSpec(
            num_scalar_prefetch=0,
            grid=(BH,),
            in_specs=[spec, spec, spec],
            out_specs=spec,
        ),
        compiler_params=pltpu.CompilerParams(
            dimension_semantics=("parallel",)),
    )(q, k, v)


# ---------------------------------------------------------------------------
# Glue: non-overlapping patch extraction (pure reshape/transpose, no im2col
# blowup since stride == kernel size).
# ---------------------------------------------------------------------------
def extract_patches(x_nchw, patch):
    B, C, H, W = x_nchw.shape
    gh, gw = H // patch, W // patch
    x = x_nchw.reshape(B, C, gh, patch, gw, patch)
    x = jnp.transpose(x, (0, 2, 4, 1, 3, 5))          # (B, gh, gw, C, ph, pw)
    return x.reshape(B * gh * gw, C * patch * patch), gh * gw


# ---------------------------------------------------------------------------
# ViT encoder block + forward.  Linear weights are stored (in, out)
# (transpose of PyTorch's (out, in)); biases/LN params/pos-embed stay f32.
# ---------------------------------------------------------------------------
def encoder_block(p, x, num_heads):
    B, S, E = x.shape
    Dh = E // num_heads
    xf = x.reshape(B * S, E)

    # --- attention sub-block ---
    h = layernorm(xf, p["ln1_g"], p["ln1_b"])
    qkv = matmul_bias(h, p["qkv_w"], p["qkv_b"])               # (B*S, 3E)
    qkv = qkv.reshape(B, S, 3, num_heads, Dh)
    qkv = jnp.transpose(qkv, (2, 0, 3, 1, 4))                  # (3,B,H,S,Dh)
    q = qkv[0].reshape(B * num_heads, S, Dh).astype(jnp.bfloat16)
    k = qkv[1].reshape(B * num_heads, S, Dh).astype(jnp.bfloat16)
    v = qkv[2].reshape(B * num_heads, S, Dh).astype(jnp.bfloat16)
    o = attention(q, k, v, scale=Dh ** -0.5)                   # (B*H, S, Dh)
    o = jnp.transpose(o.reshape(B, num_heads, S, Dh),
                      (0, 2, 1, 3)).reshape(B * S, E)
    x1 = matmul_bias(o, p["proj_w"], p["proj_b"], residual=xf)  # fused +res

    # --- MLP sub-block ---
    h2 = layernorm(x1, p["ln2_g"], p["ln2_b"])
    h2 = matmul_bias(h2, p["fc1_w"], p["fc1_b"], act="gelu")
    x2 = matmul_bias(h2, p["fc2_w"], p["fc2_b"], residual=x1)   # fused +res
    return x2.reshape(B, S, E)


def vit_forward(params, x_nchw, *, patch, num_heads):
    B = x_nchw.shape[0]
    E = params["patch_w"].shape[1]
    patches, n_patch = extract_patches(x_nchw, patch)
    tok = matmul_bias(patches, params["patch_w"], params["patch_b"])
    tok = tok.reshape(B, n_patch, E)
    cls = jnp.broadcast_to(params["cls_token"], (B, 1, E))
    x = jnp.concatenate([cls, tok], axis=1) + params["pos_embed"]
    # TODO(synk): pos_drop / attn_drop / proj_drop are identity in eval mode.
    for blk in params["blocks"]:
        x = encoder_block(blk, x, num_heads)
    B2, S, E2 = x.shape
    xf = layernorm(x.reshape(B2 * S, E2), params["ln_g"], params["ln_b"])
    cls_out = xf.reshape(B2, S, E2)[:, 0, :]                    # CLS pooling
    logits = matmul_bias(cls_out, params["head_w"], params["head_b"])
    return logits


# ---------------------------------------------------------------------------
# Deterministic parameter initialization (bf16 matmul weights, f32 the rest).
# ---------------------------------------------------------------------------
def init_params(key, *, img=32, patch=8, in_ch=3, embed=128, depth=2, heads=4,
                mlp_ratio=4, num_classes=3):
    counter = [0]

    def nk():
        counter[0] += 1
        return jax.random.fold_in(key, counter[0])

    def w(shape, std=0.02):
        return (std * jax.random.normal(nk(), shape, jnp.float32)
                ).astype(jnp.bfloat16)

    n_patch = (img // patch) ** 2
    seq = n_patch + 1
    hidden = embed * mlp_ratio

    params = {
        "patch_w": w((in_ch * patch * patch, embed)),
        "patch_b": jnp.zeros((embed,), jnp.float32),
        "cls_token": 0.02 * jax.random.normal(nk(), (1, 1, embed), jnp.float32),
        "pos_embed": 0.02 * jax.random.normal(nk(), (1, seq, embed), jnp.float32),
        "ln_g": jnp.ones((embed,), jnp.float32),
        "ln_b": jnp.zeros((embed,), jnp.float32),
        "head_w": w((embed, num_classes)),
        "head_b": jnp.zeros((num_classes,), jnp.float32),
    }
    blocks = []
    for _ in range(depth):
        blocks.append({
            "ln1_g": jnp.ones((embed,), jnp.float32),
            "ln1_b": jnp.zeros((embed,), jnp.float32),
            "qkv_w": w((embed, 3 * embed)),
            "qkv_b": jnp.zeros((3 * embed,), jnp.float32),
            "proj_w": w((embed, embed)),
            "proj_b": jnp.zeros((embed,), jnp.float32),
            "ln2_g": jnp.ones((embed,), jnp.float32),
            "ln2_b": jnp.zeros((embed,), jnp.float32),
            "fc1_w": w((embed, hidden)),
            "fc1_b": jnp.zeros((hidden,), jnp.float32),
            "fc2_w": w((hidden, embed)),
            "fc2_b": jnp.zeros((embed,), jnp.float32),
        })
    params["blocks"] = blocks
    return params


if __name__ == "__main__":
    key = jax.random.PRNGKey(0)
    pkey, xkey = jax.random.split(key)

    IMG, PATCH, EMBED, DEPTH, HEADS, CLASSES = 32, 8, 128, 2, 4, 3
    params = init_params(pkey, img=IMG, patch=PATCH, embed=EMBED, depth=DEPTH,
                         heads=HEADS, num_classes=CLASSES)
    # PyTorch-convention NCHW input: batch=2, channels=3, 32x32.
    x = jax.random.normal(xkey, (2, 3, IMG, IMG), jnp.float32)

    fwd = jax.jit(functools.partial(vit_forward, patch=PATCH, num_heads=HEADS))
    logits = fwd(params, x)
    logits = jax.block_until_ready(logits)

    assert logits.shape == (2, CLASSES), logits.shape
    assert bool(jnp.all(jnp.isfinite(logits)))
    print("KERNEL_OK")
</pallas_src>

<mosaic_0001>
module attributes {stable_mosaic.version = 11 : i64} {
  func.func @_mm_kernel(%arg0: i32, %arg1: i32, %arg2: memref<32x192xf32, #tpu.memory_space<vmem>>, %arg3: memref<192x128xbf16, #tpu.memory_space<vmem>>, %arg4: memref<1x128xf32, #tpu.memory_space<vmem>>, %arg5: memref<32x128xf32, #tpu.memory_space<vmem>>) attributes {dimension_semantics = [#tpu.dimension_semantics<parallel>, #tpu.dimension_semantics<parallel>], iteration_bounds = array<i64: 1, 1>, scalar_prefetch = 0 : i64, scratch_operands = 0 : i64, tpu.core_type = #tpu.core_type<tc>, window_params = [{transform_indices = @transform_0, window_bounds = array<i64: 32, 192>}, {transform_indices = @transform_1, window_bounds = array<i64: 192, 128>}, {transform_indices = @transform_2, window_bounds = array<i64: 1, 128>}, {transform_indices = @transform_3, window_bounds = array<i64: 32, 128>}]} {
    %c0 = arith.constant 0 : index
    %c0_0 = arith.constant 0 : index
    %0 = vector.load %arg2[%c0, %c0_0] : memref<32x192xf32, #tpu.memory_space<vmem>>, vector<32x192xf32>
    %1 = arith.truncf %0 : vector<32x192xf32> to vector<32x192xbf16>
    %c0_1 = arith.constant 0 : index
    %c0_2 = arith.constant 0 : index
    %2 = vector.load %arg3[%c0_1, %c0_2] : memref<192x128xbf16, #tpu.memory_space<vmem>>, vector<192x128xbf16>
    %cst = arith.constant dense<0.000000e+00> : vector<32x128xf32>
    %3 = tpu.matmul %1, %2, %cst {dimension_numbers = #tpu.dot_dimension_numbers<[1], [0], [0], [1], [0, 0, 1, 1], [], []>} : vector<32x192xbf16>, vector<192x128xbf16>, vector<32x128xf32> -> vector<32x128xf32>
    %c0_3 = arith.constant 0 : index
    %c0_4 = arith.constant 0 : index
    %4 = vector.load %arg4[%c0_3, %c0_4] : memref<1x128xf32, #tpu.memory_space<vmem>>, vector<1x128xf32>
    %5 = vector.broadcast %4 : vector<1x128xf32> to vector<32x128xf32>
    %6 = arith.addf %3, %5 : vector<32x128xf32>
    %c0_5 = arith.constant 0 : index
    %c0_6 = arith.constant 0 : index
    %7 = vector.load %arg5[%c0_5, %c0_6] : memref<32x128xf32, #tpu.memory_space<vmem>>, vector<32x128xf32>
    tpu.vector_store %arg5[%c0_5, %c0_6], %6 {strides = array<i32>} : memref<32x128xf32, #tpu.memory_space<vmem>>, vector<32x128xf32>,
    return
  }
  func.func @transform_0(%arg0: i32, %arg1: i32) -> (i32, i32) {
    %c0_i32 = arith.constant 0 : i32
    %c0_i32_0 = arith.constant 0 : i32
    return %arg0, %c0_i32 : i32, i32
  }
  func.func @transform_1(%arg0: i32, %arg1: i32) -> (i32, i32) {
    %c0_i32 = arith.constant 0 : i32
    %c0_i32_0 = arith.constant 0 : i32
    return %c0_i32, %arg1 : i32, i32
  }
  func.func @transform_2(%arg0: i32, %arg1: i32) -> (i32, i32) {
    %c0_i32 = arith.constant 0 : i32
    %c0_i32_0 = arith.constant 0 : i32
    return %c0_i32, %arg1 : i32, i32
  }
  func.func @transform_3(%arg0: i32, %arg1: i32) -> (i32, i32) {
    %c0_i32 = arith.constant 0 : i32
    return %arg0, %arg1 : i32, i32
  }
}

module attributes {stable_mosaic.version = 11 : i64} {
  func.func @_mm_kernel(%arg0: i32, %arg1: i32, %arg2: memref<34x128xf32, #tpu.memory_space<vmem>>, %arg3: memref<128x384xbf16, #tpu.memory_space<vmem>>, %arg4: memref<1x384xf32, #tpu.memory_space<vmem>>, %arg5: memref<34x384xf32, #tpu.memory_space<vmem>>) attributes {dimension_semantics = [#tpu.dimension_semantics<parallel>, #tpu.dimension_semantics<parallel>], iteration_bounds = array<i64: 1, 1>, scalar_prefetch = 0 : i64, scratch_operands = 0 : i64, tpu.core_type = #tpu.core_type<tc>, window_params = [{transform_indices = @transform_0, window_bounds = array<i64: 34, 128>}, {transform_indices = @transform_1, window_bounds = array<i64: 128, 384>}, {transform_indices = @transform_2, window_bounds = array<i64: 1, 384>}, {transform_indices = @transform_3, window_bounds = array<i64: 34, 384>}]} {
    %c0 = arith.constant 0 : index
    %c0_0 = arith.constant 0 : index
    %0 = vector.load %arg2[%c0, %c0_0] : memref<34x128xf32, #tpu.memory_space<vmem>>, vector<34x128xf32>
    %1 = arith.truncf %0 : vector<34x128xf32> to vector<34x128xbf16>
    %c0_1 = arith.constant 0 : index
    %c0_2 = arith.constant 0 : index
    %2 = vector.load %arg3[%c0_1, %c0_2] : memref<128x384xbf16, #tpu.memory_space<vmem>>, vector<128x384xbf16>
    %cst = arith.constant dense<0.000000e+00> : vector<34x384xf32>
    %3 = tpu.matmul %1, %2, %cst {dimension_numbers = #tpu.dot_dimension_numbers<[1], [0], [0], [1], [0, 0, 1, 1], [], []>} : vector<34x128xbf16>, vector<128x384xbf16>, vector<34x384xf32> -> vector<34x384xf32>
    %c0_3 = arith.constant 0 : index
    %c0_4 = arith.constant 0 : index
    %4 = vector.load %arg4[%c0_3, %c0_4] : memref<1x384xf32, #tpu.memory_space<vmem>>, vector<1x384xf32>
    %5 = vector.broadcast %4 : vector<1x384xf32> to vector<34x384xf32>
    %6 = arith.addf %3, %5 : vector<34x384xf32>
    %c0_5 = arith.constant 0 : index
    %c0_6 = arith.constant 0 : index
    %7 = vector.load %arg5[%c0_5, %c0_6] : memref<34x384xf32, #tpu.memory_space<vmem>>, vector<34x384xf32>
    tpu.vector_store %arg5[%c0_5, %c0_6], %6 {strides = array<i32>} : memref<34x384xf32, #tpu.memory_space<vmem>>, vector<34x384xf32>,
    return
  }
  func.func @transform_0(%arg0: i32, %arg1: i32) -> (i32, i32) {
    %c0_i32 = arith.constant 0 : i32
    %c0_i32_0 = arith.constant 0 : i32
    return %arg0, %c0_i32 : i32, i32
  }
  func.func @transform_1(%arg0: i32, %arg1: i32) -> (i32, i32) {
    %c0_i32 = arith.constant 0 : i32
    %c0_i32_0 = arith.constant 0 : i32
    return %c0_i32, %arg1 : i32, i32
  }
  func.func @transform_2(%arg0: i32, %arg1: i32) -> (i32, i32) {
    %c0_i32 = arith.constant 0 : i32
    %c0_i32_0 = arith.constant 0 : i32
    return %c0_i32, %arg1 : i32, i32
  }
  func.func @transform_3(%arg0: i32, %arg1: i32) -> (i32, i32) {
    %c0_i32 = arith.constant 0 : i32
    return %arg0, %arg1 : i32, i32
  }
}

module attributes {stable_mosaic.version = 11 : i64} {
  func.func @_ln_kernel(%arg0: i32, %arg1: memref<34x128xf32, #tpu.memory_space<vmem>>, %arg2: memref<1x128xf32, #tpu.memory_space<vmem>>, %arg3: memref<1x128xf32, #tpu.memory_space<vmem>>, %arg4: memref<34x128xf32, #tpu.memory_space<vmem>>) attributes {dimension_semantics = [#tpu.dimension_semantics<parallel>], iteration_bounds = array<i64: 1>, scalar_prefetch = 0 : i64, scratch_operands = 0 : i64, tpu.core_type = #tpu.core_type<tc>, window_params = [{transform_indices = @transform_0, window_bounds = array<i64: 34, 128>}, {pipeline_mode = #tpu.pipeline_mode<synchronous>, transform_indices = @transform_1, window_bounds = array<i64: 1, 128>}, {pipeline_mode = #tpu.pipeline_mode<synchronous>, transform_indices = @transform_2, window_bounds = array<i64: 1, 128>}, {transform_indices = @transform_3, window_bounds = array<i64: 34, 128>}]} {
    %c0 = arith.constant 0 : index
    %c0_0 = arith.constant 0 : index
    %0 = vector.load %arg1[%c0, %c0_0] : memref<34x128xf32, #tpu.memory_space<vmem>>, vector<34x128xf32>
    %cst = arith.constant dense<0.000000e+00> : vector<34xf32>
    %1 = vector.multi_reduction <add>, %0, %cst [1] : vector<34x128xf32> to vector<34xf32>
    %2 = vector.shape_cast %1 : vector<34xf32> to vector<34x1xf32>
    %cst_1 = arith.constant 1.280000e+02 : f32
    %3 = vector.broadcast %cst_1 : f32 to vector<34x1xf32>
    %4 = arith.divf %2, %3 : vector<34x1xf32>
    %5 = vector.broadcast %4 : vector<34x1xf32> to vector<34x128xf32>
    %6 = arith.subf %0, %5 : vector<34x128xf32>
    %7 = arith.mulf %6, %6 : vector<34x128xf32>
    %cst_2 = arith.constant dense<0.000000e+00> : vector<34xf32>
    %8 = vector.multi_reduction <add>, %7, %cst_2 [1] : vector<34x128xf32> to vector<34xf32>
    %9 = vector.shape_cast %8 : vector<34xf32> to vector<34x1xf32>
    %cst_3 = arith.constant 1.280000e+02 : f32
    %10 = vector.broadcast %cst_3 : f32 to vector<34x1xf32>
    %11 = arith.divf %9, %10 : vector<34x1xf32>
    %cst_4 = arith.constant 9.99999997E-7 : f32
    %12 = vector.broadcast %cst_4 : f32 to vector<34x1xf32>
    %13 = arith.addf %11, %12 : vector<34x1xf32>
    %14 = math.rsqrt %13 : vector<34x1xf32>
    %15 = vector.broadcast %14 : vector<34x1xf32> to vector<34x128xf32>
    %16 = arith.mulf %6, %15 : vector<34x128xf32>
    %c0_5 = arith.constant 0 : index
    %c0_6 = arith.constant 0 : index
    %17 = vector.load %arg2[%c0_5, %c0_6] : memref<1x128xf32, #tpu.memory_space<vmem>>, vector<1x128xf32>
    %18 = vector.broadcast %17 : vector<1x128xf32> to vector<34x128xf32>
    %19 = arith.mulf %16, %18 : vector<34x128xf32>
    %c0_7 = arith.constant 0 : index
    %c0_8 = arith.constant 0 : index
    %20 = vector.load %arg3[%c0_7, %c0_8] : memref<1x128xf32, #tpu.memory_space<vmem>>, vector<1x128xf32>
    %21 = vector.broadcast %20 : vector<1x128xf32> to vector<34x128xf32>
    %22 = arith.addf %19, %21 : vector<34x128xf32>
    %c0_9 = arith.constant 0 : index
    %c0_10 = arith.constant 0 : index
    %23 = vector.load %arg4[%c0_9, %c0_10] : memref<34x128xf32, #tpu.memory_space<vmem>>, vector<34x128xf32>
    tpu.vector_store %arg4[%c0_9, %c0_10], %22 {strides = array<i32>} : memref<34x128xf32, #tpu.memory_space<vmem>>, vector<34x128xf32>,
    return
  }
  func.func @transform_0(%arg0: i32) -> (i32, i32) {
    %c0_i32 = arith.constant 0 : i32
    %c0_i32_0 = arith.constant 0 : i32
    return %arg0, %c0_i32 : i32, i32
  }
  func.func @transform_1(%arg0: i32) -> (i32, i32) {
    %c0_i32 = arith.constant 0 : i32
    %c0_i32_0 = arith.constant 0 : i32
    %c0_i32_1 = arith.constant 0 : i32
    return %c0_i32, %c0_i32_0 : i32, i32
  }
  func.func @transform_2(%arg0: i32) -> (i32, i32) {
    %c0_i32 = arith.constant 0 : i32
    %c0_i32_0 = arith.constant 0 : i32
    %c0_i32_1 = arith.constant 0 : i32
    return %c0_i32, %c0_i32_0 : i32, i32
  }
  func.func @transform_3(%arg0: i32) -> (i32, i32) {
    %c0_i32 = arith.constant 0 : i32
    %c0_i32_0 = arith.constant 0 : i32
    return %arg0, %c0_i32 : i32, i32
  }
}

module attributes {stable_mosaic.version = 11 : i64} {
  func.func @_attn_kernel(%arg0: i32, %arg1: memref<1x17x32xbf16, #tpu.memory_space<vmem>>, %arg2: memref<1x17x32xbf16, #tpu.memory_space<vmem>>, %arg3: memref<1x17x32xbf16, #tpu.memory_space<vmem>>, %arg4: memref<1x17x32xf32, #tpu.memory_space<vmem>>) attributes {dimension_semantics = [#tpu.dimension_semantics<parallel>], iteration_bounds = array<i64: 8>, scalar_prefetch = 0 : i64, scratch_operands = 0 : i64, tpu.core_type = #tpu.core_type<tc>, window_params = [{transform_indices = @transform_0, window_bounds = array<i64: 1, 17, 32>}, {transform_indices = @transform_1, window_bounds = array<i64: 1, 17, 32>}, {transform_indices = @transform_2, window_bounds = array<i64: 1, 17, 32>}, {transform_indices = @transform_3, window_bounds = array<i64: 1, 17, 32>}]} {
    %c0 = arith.constant 0 : index
    %c0_0 = arith.constant 0 : index
    %c0_1 = arith.constant 0 : index
    %0 = vector.load %arg1[%c0, %c0_0, %c0_1] : memref<1x17x32xbf16, #tpu.memory_space<vmem>>, vector<1x17x32xbf16>
    %c0_2 = arith.constant 0 : index
    %c0_3 = arith.constant 0 : index
    %c0_4 = arith.constant 0 : index
    %1 = vector.load %arg2[%c0_2, %c0_3, %c0_4] : memref<1x17x32xbf16, #tpu.memory_space<vmem>>, vector<1x17x32xbf16>
    "tpu.trace_start"() <{level = 10 : i32, message = "bqd,bkd->bqk"}> : () -> ()
    %cst = arith.constant dense<0.000000e+00> : vector<1x17x17xf32>
    %2 = tpu.matmul %0, %1, %cst {dimension_numbers = #tpu.dot_dimension_numbers<[2], [2], [1], [1], [0, 0, 0, 1, 1, 1], [0], [0]>} : vector<1x17x32xbf16>, vector<1x17x32xbf16>, vector<1x17x17xf32> -> vector<1x17x17xf32>
    "tpu.trace_stop"() : () -> ()
    %cst_5 = arith.constant 0.176776692 : f32
    %3 = vector.broadcast %cst_5 : f32 to vector<1x17x17xf32>
    %4 = arith.mulf %2, %3 : vector<1x17x17xf32>
    %cst_6 = arith.constant dense<0xFF800000> : vector<1x17xf32>
    %5 = vector.multi_reduction <maximumf>, %4, %cst_6 [2] : vector<1x17x17xf32> to vector<1x17xf32>
    %6 = vector.shape_cast %5 : vector<1x17xf32> to vector<1x17x1xf32>
    %7 = vector.broadcast %6 : vector<1x17x1xf32> to vector<1x17x17xf32>
    %8 = arith.subf %4, %7 : vector<1x17x17xf32>
    %9 = math.exp %8 : vector<1x17x17xf32>
    %cst_7 = arith.constant dense<0.000000e+00> : vector<1x17xf32>
    %10 = vector.multi_reduction <add>, %9, %cst_7 [2] : vector<1x17x17xf32> to vector<1x17xf32>
    %11 = vector.shape_cast %10 : vector<1x17xf32> to vector<1x17x1xf32>
    %12 = arith.truncf %9 : vector<1x17x17xf32> to vector<1x17x17xbf16>
    %c0_8 = arith.constant 0 : index
    %c0_9 = arith.constant 0 : index
    %c0_10 = arith.constant 0 : index
    %13 = vector.load %arg3[%c0_8, %c0_9, %c0_10] : memref<1x17x32xbf16, #tpu.memory_space<vmem>>, vector<1x17x32xbf16>
    "tpu.trace_start"() <{level = 10 : i32, message = "bqk,bkd->bqd"}> : () -> ()
    %cst_11 = arith.constant dense<0.000000e+00> : vector<1x17x32xf32>
    %14 = tpu.matmul %12, %13, %cst_11 {dimension_numbers = #tpu.dot_dimension_numbers<[2], [1], [1], [2], [0, 0, 0, 1, 1, 2], [0], [0]>} : vector<1x17x17xbf16>, vector<1x17x32xbf16>, vector<1x17x32xf32> -> vector<1x17x32xf32>
    "tpu.trace_stop"() : () -> ()
    %15 = vector.broadcast %11 : vector<1x17x1xf32> to vector<1x17x32xf32>
    %16 = arith.divf %14, %15 : vector<1x17x32xf32>
    %c0_12 = arith.constant 0 : index
    %c0_13 = arith.constant 0 : index
    %c0_14 = arith.constant 0 : index
    %17 = vector.load %arg4[%c0_12, %c0_13, %c0_14] : memref<1x17x32xf32, #tpu.memory_space<vmem>>, vector<1x17x32xf32>
    tpu.vector_store %arg4[%c0_12, %c0_13, %c0_14], %16 {strides = array<i32>} : memref<1x17x32xf32, #tpu.memory_space<vmem>>, vector<1x17x32xf32>,
    return
  }
  func.func @transform_0(%arg0: i32) -> (i32, i32, i32) {
    %c0_i32 = arith.constant 0 : i32
    %c0_i32_0 = arith.constant 0 : i32
    %c0_i32_1 = arith.constant 0 : i32
    return %arg0, %c0_i32, %c0_i32_0 : i32, i32, i32
  }
  func.func @transform_1(%arg0: i32) -> (i32, i32, i32) {
    %c0_i32 = arith.constant 0 : i32
    %c0_i32_0 = arith.constant 0 : i32
    %c0_i32_1 = arith.constant 0 : i32
    return %arg0, %c0_i32, %c0_i32_0 : i32, i32, i32
  }
  func.func @transform_2(%arg0: i32) -> (i32, i32, i32) {
    %c0_i32 = arith.constant 0 : i32
    %c0_i32_0 = arith.constant 0 : i32
    %c0_i32_1 = arith.constant 0 : i32
    return %arg0, %c0_i32, %c0_i32_0 : i32, i32, i32
  }
  func.func @transform_3(%arg0: i32) -> (i32, i32, i32) {
    %c0_i32 = arith.constant 0 : i32
    %c0_i32_0 = arith.constant 0 : i32
    %c0_i32_1 = arith.constant 0 : i32
    return %arg0, %c0_i32, %c0_i32_0 : i32, i32, i32
  }
}

module attributes {stable_mosaic.version = 11 : i64} {
  func.func @_mm_res_kernel(%arg0: i32, %arg1: i32, %arg2: memref<34x128xf32, #tpu.memory_space<vmem>>, %arg3: memref<128x128xbf16, #tpu.memory_space<vmem>>, %arg4: memref<1x128xf32, #tpu.memory_space<vmem>>, %arg5: memref<34x128xf32, #tpu.memory_space<vmem>>, %arg6: memref<34x128xf32, #tpu.memory_space<vmem>>) attributes {dimension_semantics = [#tpu.dimension_semantics<parallel>, #tpu.dimension_semantics<parallel>], iteration_bounds = array<i64: 1, 1>, scalar_prefetch = 0 : i64, scratch_operands = 0 : i64, tpu.core_type = #tpu.core_type<tc>, window_params = [{transform_indices = @transform_0, window_bounds = array<i64: 34, 128>}, {transform_indices = @transform_1, window_bounds = array<i64: 128, 128>}, {transform_indices = @transform_2, window_bounds = array<i64: 1, 128>}, {transform_indices = @transform_3, window_bounds = array<i64: 34, 128>}, {transform_indices = @transform_4, window_bounds = array<i64: 34, 128>}]} {
    %c0 = arith.constant 0 : index
    %c0_0 = arith.constant 0 : index
    %0 = vector.load %arg2[%c0, %c0_0] : memref<34x128xf32, #tpu.memory_space<vmem>>, vector<34x128xf32>
    %1 = arith.truncf %0 : vector<34x128xf32> to vector<34x128xbf16>
    %c0_1 = arith.constant 0 : index
    %c0_2 = arith.constant 0 : index
    %2 = vector.load %arg3[%c0_1, %c0_2] : memref<128x128xbf16, #tpu.memory_space<vmem>>, vector<128x128xbf16>
    %cst = arith.constant dense<0.000000e+00> : vector<34x128xf32>
    %3 = tpu.matmul %1, %2, %cst {dimension_numbers = #tpu.dot_dimension_numbers<[1], [0], [0], [1], [0, 0, 1, 1], [], []>} : vector<34x128xbf16>, vector<128x128xbf16>, vector<34x128xf32> -> vector<34x128xf32>
    %c0_3 = arith.constant 0 : index
    %c0_4 = arith.constant 0 : index
    %4 = vector.load %arg4[%c0_3, %c0_4] : memref<1x128xf32, #tpu.memory_space<vmem>>, vector<1x128xf32>
    %5 = vector.broadcast %4 : vector<1x128xf32> to vector<34x128xf32>
    %6 = arith.addf %3, %5 : vector<34x128xf32>
    %c0_5 = arith.constant 0 : index
    %c0_6 = arith.constant 0 : index
    %7 = vector.load %arg5[%c0_5, %c0_6] : memref<34x128xf32, #tpu.memory_space<vmem>>, vector<34x128xf32>
    %8 = arith.addf %6, %7 : vector<34x128xf32>
    %c0_7 = arith.constant 0 : index
    %c0_8 = arith.constant 0 : index
    %9 = vector.load %arg6[%c0_7, %c0_8] : memref<34x128xf32, #tpu.memory_space<vmem>>, vector<34x128xf32>
    tpu.vector_store %arg6[%c0_7, %c0_8], %8 {strides = array<i32>} : memref<34x128xf32, #tpu.memory_space<vmem>>, vector<34x128xf32>,
    return
  }
  func.func @transform_0(%arg0: i32, %arg1: i32) -> (i32, i32) {
    %c0_i32 = arith.constant 0 : i32
    %c0_i32_0 = arith.constant 0 : i32
    return %arg0, %c0_i32 : i32, i32
  }
  func.func @transform_1(%arg0: i32, %arg1: i32) -> (i32, i32) {
    %c0_i32 = arith.constant 0 : i32
    %c0_i32_0 = arith.constant 0 : i32
    return %c0_i32, %arg1 : i32, i32
  }
  func.func @transform_2(%arg0: i32, %arg1: i32) -> (i32, i32) {
    %c0_i32 = arith.constant 0 : i32
    %c0_i32_0 = arith.constant 0 : i32
    return %c0_i32, %arg1 : i32, i32
  }
  func.func @transform_3(%arg0: i32, %arg1: i32) -> (i32, i32) {
    %c0_i32 = arith.constant 0 : i32
    return %arg0, %arg1 : i32, i32
  }
  func.func @transform_4(%arg0: i32, %arg1: i32) -> (i32, i32) {
    %c0_i32 = arith.constant 0 : i32
    return %arg0, %arg1 : i32, i32
  }
}

module attributes {stable_mosaic.version = 11 : i64} {
  func.func @_mm_res_kernel(%arg0: i32, %arg1: i32, %arg2: memref<34x512xf32, #tpu.memory_space<vmem>>, %arg3: memref<512x128xbf16, #tpu.memory_space<vmem>>, %arg4: memref<1x128xf32, #tpu.memory_space<vmem>>, %arg5: memref<34x128xf32, #tpu.memory_space<vmem>>, %arg6: memref<34x128xf32, #tpu.memory_space<vmem>>) attributes {dimension_semantics = [#tpu.dimension_semantics<parallel>, #tpu.dimension_semantics<parallel>], iteration_bounds = array<i64: 1, 1>, scalar_prefetch = 0 : i64, scratch_operands = 0 : i64, tpu.core_type = #tpu.core_type<tc>, window_params = [{transform_indices = @transform_0, window_bounds = array<i64: 34, 512>}, {transform_indices = @transform_1, window_bounds = array<i64: 512, 128>}, {transform_indices = @transform_2, window_bounds = array<i64: 1, 128>}, {transform_indices = @transform_3, window_bounds = array<i64: 34, 128>}, {transform_indices = @transform_4, window_bounds = array<i64: 34, 128>}]} {
    %c0 = arith.constant 0 : index
    %c0_0 = arith.constant 0 : index
    %0 = vector.load %arg2[%c0, %c0_0] : memref<34x512xf32, #tpu.memory_space<vmem>>, vector<34x512xf32>
    %1 = arith.truncf %0 : vector<34x512xf32> to vector<34x512xbf16>
    %c0_1 = arith.constant 0 : index
    %c0_2 = arith.constant 0 : index
    %2 = vector.load %arg3[%c0_1, %c0_2] : memref<512x128xbf16, #tpu.memory_space<vmem>>, vector<512x128xbf16>
    %cst = arith.constant dense<0.000000e+00> : vector<34x128xf32>
    %3 = tpu.matmul %1, %2, %cst {dimension_numbers = #tpu.dot_dimension_numbers<[1], [0], [0], [1], [0, 0, 1, 1], [], []>} : vector<34x512xbf16>, vector<512x128xbf16>, vector<34x128xf32> -> vector<34x128xf32>
    %c0_3 = arith.constant 0 : index
    %c0_4 = arith.constant 0 : index
    %4 = vector.load %arg4[%c0_3, %c0_4] : memref<1x128xf32, #tpu.memory_space<vmem>>, vector<1x128xf32>
    %5 = vector.broadcast %4 : vector<1x128xf32> to vector<34x128xf32>
    %6 = arith.addf %3, %5 : vector<34x128xf32>
    %c0_5 = arith.constant 0 : index
    %c0_6 = arith.constant 0 : index
    %7 = vector.load %arg5[%c0_5, %c0_6] : memref<34x128xf32, #tpu.memory_space<vmem>>, vector<34x128xf32>
    %8 = arith.addf %6, %7 : vector<34x128xf32>
    %c0_7 = arith.constant 0 : index
    %c0_8 = arith.constant 0 : index
    %9 = vector.load %arg6[%c0_7, %c0_8] : memref<34x128xf32, #tpu.memory_space<vmem>>, vector<34x128xf32>
    tpu.vector_store %arg6[%c0_7, %c0_8], %8 {strides = array<i32>} : memref<34x128xf32, #tpu.memory_space<vmem>>, vector<34x128xf32>,
    return
  }
  func.func @transform_0(%arg0: i32, %arg1: i32) -> (i32, i32) {
    %c0_i32 = arith.constant 0 : i32
    %c0_i32_0 = arith.constant 0 : i32
    return %arg0, %c0_i32 : i32, i32
  }
  func.func @transform_1(%arg0: i32, %arg1: i32) -> (i32, i32) {
    %c0_i32 = arith.constant 0 : i32
    %c0_i32_0 = arith.constant 0 : i32
    return %c0_i32, %arg1 : i32, i32
  }
  func.func @transform_2(%arg0: i32, %arg1: i32) -> (i32, i32) {
    %c0_i32 = arith.constant 0 : i32
    %c0_i32_0 = arith.constant 0 : i32
    return %c0_i32, %arg1 : i32, i32
  }
  func.func @transform_3(%arg0: i32, %arg1: i32) -> (i32, i32) {
    %c0_i32 = arith.constant 0 : i32
    return %arg0, %arg1 : i32, i32
  }
  func.func @transform_4(%arg0: i32, %arg1: i32) -> (i32, i32) {
    %c0_i32 = arith.constant 0 : i32
    return %arg0, %arg1 : i32, i32
  }
}

module attributes {stable_mosaic.version = 11 : i64} {
  func.func @_mm_kernel(%arg0: i32, %arg1: i32, %arg2: memref<34x128xf32, #tpu.memory_space<vmem>>, %arg3: memref<128x512xbf16, #tpu.memory_space<vmem>>, %arg4: memref<1x512xf32, #tpu.memory_space<vmem>>, %arg5: memref<34x512xf32, #tpu.memory_space<vmem>>) attributes {dimension_semantics = [#tpu.dimension_semantics<parallel>, #tpu.dimension_semantics<parallel>], iteration_bounds = array<i64: 1, 1>, scalar_prefetch = 0 : i64, scratch_operands = 0 : i64, tpu.core_type = #tpu.core_type<tc>, window_params = [{transform_indices = @transform_0, window_bounds = array<i64: 34, 128>}, {transform_indices = @transform_1, window_bounds = array<i64: 128, 512>}, {transform_indices = @transform_2, window_bounds = array<i64: 1, 512>}, {transform_indices = @transform_3, window_bounds = array<i64: 34, 512>}]} {
    %c0 = arith.constant 0 : index
    %c0_0 = arith.constant 0 : index
    %0 = vector.load %arg2[%c0, %c0_0] : memref<34x128xf32, #tpu.memory_space<vmem>>, vector<34x128xf32>
    %1 = arith.truncf %0 : vector<34x128xf32> to vector<34x128xbf16>
    %c0_1 = arith.constant 0 : index
    %c0_2 = arith.constant 0 : index
    %2 = vector.load %arg3[%c0_1, %c0_2] : memref<128x512xbf16, #tpu.memory_space<vmem>>, vector<128x512xbf16>
    %cst = arith.constant dense<0.000000e+00> : vector<34x512xf32>
    %3 = tpu.matmul %1, %2, %cst {dimension_numbers = #tpu.dot_dimension_numbers<[1], [0], [0], [1], [0, 0, 1, 1], [], []>} : vector<34x128xbf16>, vector<128x512xbf16>, vector<34x512xf32> -> vector<34x512xf32>
    %c0_3 = arith.constant 0 : index
    %c0_4 = arith.constant 0 : index
    %4 = vector.load %arg4[%c0_3, %c0_4] : memref<1x512xf32, #tpu.memory_space<vmem>>, vector<1x512xf32>
    %5 = vector.broadcast %4 : vector<1x512xf32> to vector<34x512xf32>
    %6 = arith.addf %3, %5 : vector<34x512xf32>
    %7 = arith.mulf %6, %6 : vector<34x512xf32>
    %8 = arith.mulf %6, %7 : vector<34x512xf32>
    %cst_5 = arith.constant 4.471500e-02 : f32
    %9 = vector.broadcast %cst_5 : f32 to vector<34x512xf32>
    %10 = arith.mulf %9, %8 : vector<34x512xf32>
    %11 = arith.addf %6, %10 : vector<34x512xf32>
    %cst_6 = arith.constant 0.797884583 : f32
    %12 = vector.broadcast %cst_6 : f32 to vector<34x512xf32>
    %13 = arith.mulf %12, %11 : vector<34x512xf32>
    %14 = math.tanh %13 : vector<34x512xf32>
    %cst_7 = arith.constant 1.000000e+00 : f32
    %15 = vector.broadcast %cst_7 : f32 to vector<34x512xf32>
    %16 = arith.addf %15, %14 : vector<34x512xf32>
    %cst_8 = arith.constant 5.000000e-01 : f32
    %17 = vector.broadcast %cst_8 : f32 to vector<34x512xf32>
    %18 = arith.mulf %17, %16 : vector<34x512xf32>
    %19 = arith.mulf %6, %18 : vector<34x512xf32>
    %c0_9 = arith.constant 0 : index
    %c0_10 = arith.constant 0 : index
    %20 = vector.load %arg5[%c0_9, %c0_10] : memref<34x512xf32, #tpu.memory_space<vmem>>, vector<34x512xf32>
    tpu.vector_store %arg5[%c0_9, %c0_10], %19 {strides = array<i32>} : memref<34x512xf32, #tpu.memory_space<vmem>>, vector<34x512xf32>,
    return
  }
  func.func @transform_0(%arg0: i32, %arg1: i32) -> (i32, i32) {
    %c0_i32 = arith.constant 0 : i32
    %c0_i32_0 = arith.constant 0 : i32
    return %arg0, %c0_i32 : i32, i32
  }
  func.func @transform_1(%arg0: i32, %arg1: i32) -> (i32, i32) {
    %c0_i32 = arith.constant 0 : i32
    %c0_i32_0 = arith.constant 0 : i32
    return %c0_i32, %arg1 : i32, i32
  }
  func.func @transform_2(%arg0: i32, %arg1: i32) -> (i32, i32) {
    %c0_i32 = arith.constant 0 : i32
    %c0_i32_0 = arith.constant 0 : i32
    return %c0_i32, %arg1 : i32, i32
  }
  func.func @transform_3(%arg0: i32, %arg1: i32) -> (i32, i32) {
    %c0_i32 = arith.constant 0 : i32
    return %arg0, %arg1 : i32, i32
  }
}

module attributes {stable_mosaic.version = 11 : i64} {
  func.func @_mm_kernel(%arg0: i32, %arg1: i32, %arg2: memref<2x128xf32, #tpu.memory_space<vmem>>, %arg3: memref<128x3xbf16, #tpu.memory_space<vmem>>, %arg4: memref<1x3xf32, #tpu.memory_space<vmem>>, %arg5: memref<2x3xf32, #tpu.memory_space<vmem>>) attributes {dimension_semantics = [#tpu.dimension_semantics<parallel>, #tpu.dimension_semantics<parallel>], iteration_bounds = array<i64: 1, 1>, scalar_prefetch = 0 : i64, scratch_operands = 0 : i64, tpu.core_type = #tpu.core_type<tc>, window_params = [{transform_indices = @transform_0, window_bounds = array<i64: 2, 128>}, {transform_indices = @transform_1, window_bounds = array<i64: 128, 3>}, {transform_indices = @transform_2, window_bounds = array<i64: 1, 3>}, {transform_indices = @transform_3, window_bounds = array<i64: 2, 3>}]} {
    %c0 = arith.constant 0 : index
    %c0_0 = arith.constant 0 : index
    %0 = vector.load %arg2[%c0, %c0_0] : memref<2x128xf32, #tpu.memory_space<vmem>>, vector<2x128xf32>
    %1 = arith.truncf %0 : vector<2x128xf32> to vector<2x128xbf16>
    %c0_1 = arith.constant 0 : index
    %c0_2 = arith.constant 0 : index
    %2 = vector.load %arg3[%c0_1, %c0_2] : memref<128x3xbf16, #tpu.memory_space<vmem>>, vector<128x3xbf16>
    %cst = arith.constant dense<0.000000e+00> : vector<2x3xf32>
    %3 = tpu.matmul %1, %2, %cst {dimension_numbers = #tpu.dot_dimension_numbers<[1], [0], [0], [1], [0, 0, 1, 1], [], []>} : vector<2x128xbf16>, vector<128x3xbf16>, vector<2x3xf32> -> vector<2x3xf32>
    %c0_3 = arith.constant 0 : index
    %c0_4 = arith.constant 0 : index
    %4 = vector.load %arg4[%c0_3, %c0_4] : memref<1x3xf32, #tpu.memory_space<vmem>>, vector<1x3xf32>
    %5 = vector.broadcast %4 : vector<1x3xf32> to vector<2x3xf32>
    %6 = arith.addf %3, %5 : vector<2x3xf32>
    %c0_5 = arith.constant 0 : index
    %c0_6 = arith.constant 0 : index
    %7 = vector.load %arg5[%c0_5, %c0_6] : memref<2x3xf32, #tpu.memory_space<vmem>>, vector<2x3xf32>
    tpu.vector_store %arg5[%c0_5, %c0_6], %6 {strides = array<i32>} : memref<2x3xf32, #tpu.memory_space<vmem>>, vector<2x3xf32>,
    return
  }
  func.func @transform_0(%arg0: i32, %arg1: i32) -> (i32, i32) {
    %c0_i32 = arith.constant 0 : i32
    %c0_i32_0 = arith.constant 0 : i32
    return %arg0, %c0_i32 : i32, i32
  }
  func.func @transform_1(%arg0: i32, %arg1: i32) -> (i32, i32) {
    %c0_i32 = arith.constant 0 : i32
    %c0_i32_0 = arith.constant 0 : i32
    return %c0_i32, %arg1 : i32, i32
  }
  func.func @transform_2(%arg0: i32, %arg1: i32) -> (i32, i32) {
    %c0_i32 = arith.constant 0 : i32
    %c0_i32_0 = arith.constant 0 : i32
    return %c0_i32, %arg1 : i32, i32
  }
  func.func @transform_3(%arg0: i32, %arg1: i32) -> (i32, i32) {
    %c0_i32 = arith.constant 0 : i32
    return %arg0, %arg1 : i32, i32
  }
}

</mosaic_0001>

<bundles_post_ra>
// kernel: vit_forward.17
= control target key start
LH: loop header
LB: loop body
LE: loop exit
PB: predicated region body
PF: predicated region fallthrough
CT: control target
= control target key end

     0   :  { %vm127_vm0 = vcmask 523264   ;;  %s348_s1 = inlined_call_operand.vmem [shape: bf16[192,128], index: 1, kind: input, shape index: {}]   ;;  %s349_s0 = inlined_call_operand.vmem [shape: f32[32,192], index: 0, kind: input, shape index: {}]   ;;  %s350_s2 = inlined_call_operand.vmem [shape: f32[1,128], index: 2, kind: input, shape index: {}]   ;;  %s351_s3 = inlined_call_operand.vmem [shape: f32[32,128], index: 3, kind: output, shape index: {}]  }
   0x1   :  { %v237_v0 = vld [vmem:[%s348_s1 + $0x38] sm:$0xff]  ;;  %v236_v2 = vld [vmem:[%s348_s1 + $0x30] sm:$0xff]  ;;  %v235_v4 = vld [vmem:[%s348_s1 + $0x28] sm:$0xff] }
   0x2   :  { %v241_v1 = vld [vmem:[%s348_s1 + $0x58] sm:$0xff]  ;;  %134 = vmatpush.bf16.msra.mxu0 %v237_v0  ;;  %242 = vmatpush.bf16.msra.mxu2 %v237_v0  ;;  %v240_v3 = vld [vmem:[%s348_s1 + $0x50] sm:$0xff]  ;;  %v239_v5 = vld [vmem:[%s348_s1 + $0x48] sm:$0xff] }
   0x3   :  { %157 = vmatpush.bf16.msra.mxu1 %v241_v1  ;;  %v234_v6 = vld [vmem:[%s348_s1 + $0x20] sm:$0xff]  ;;  %v16_v8 = vld [vmem:[%s349_s0 + $0x8] sm:$0xff]  ;;  %v18_v9 = vld [vmem:[%s349_s0 + $0x18] sm:$0xff] }
   0x4   :  { %v238_v7 = vld [vmem:[%s348_s1 + $0x40] sm:$0xff]  ;;  %v24_v10 = vpack.c.bf16 %v18_v9, %v16_v8  ;;  %v233_v11 = vld [vmem:[%s348_s1 + $0x18] sm:$0xff]  ;;  %v232_v12 = vld [vmem:[%s348_s1 + $0x10] sm:$0xff] }
   0x5   :  { %v231_v13 = vld [vmem:[%s348_s1 + $0x8] sm:$0xff]  ;;  %v230_v14 = vld [vmem:[%s348_s1] sm:$0xff]  ;;  %v17_v16 = vld [vmem:[%s349_s0 + $0x10] sm:$0xff] }
   0x6   :  { %135 = vmatpush.bf16.msra.mxu0 %v236_v2  ;;  %243 = vmatpush.bf16.msra.mxu2 %v236_v2  ;;  %v15_v15 = vld [vmem:[%s349_s0] sm:$0xff]  ;;  %v21_v18 = vld [vmem:[%s349_s0 + $0x30] sm:$0xff]  ;;  %v20_v19 = vld [vmem:[%s349_s0 + $0x28] sm:$0xff] }
   0x7   :  { %158 = vmatpush.bf16.msra.mxu1 %v240_v3  ;;  %v19_v17 = vld [vmem:[%s349_s0 + $0x20] sm:$0xff]  ;;  %v22_v20 = vld [vmem:[%s349_s0 + $0x38] sm:$0xff]  ;;  %v23_v21 = vpack.c.bf16 %v17_v16, %v15_v15 }
   0x8   :  { %v25_v22 = vpack.c.bf16 %v21_v18, %v19_v17  ;;  %v26_v23 = vpack.c.bf16 %v22_v20, %v20_v19  ;;  %v250_v26 = vld [vmem:[%s350_s2] ss:$0 sm:$0xff] }
   0xa   :  { %136 = vmatpush.bf16.msra.mxu0 %v235_v4  ;;  %244 = vmatpush.bf16.msra.mxu2 %v235_v4 }
   0xb   :  { %159 = vmatpush.bf16.msra.mxu1 %v239_v5 }
   0xe   :  { %137 = vmatpush.bf16.msra.mxu0 %v234_v6  ;;  %245 = vmatpush.bf16.msra.mxu2 %v234_v6 }
   0xf   :  { %160 = vmatpush.bf16.msra.mxu1 %v238_v7 }
  0x12   :  { %228 = vmatmul.msk.bf16.vlgmr.msra.gmra.mxu1 %vm127_vm0, %v24_v10  ;;  %138 = vmatpush.bf16.msra.mxu0 %v233_v11 }
  0x13   :  { %246 = vmatpush.bf16.msra.mxu2 %v233_v11 }
  0x16   :  { %139 = vmatpush.bf16.msra.mxu0 %v232_v12 }
  0x17   :  { %247 = vmatpush.bf16.msra.mxu2 %v232_v12 }
  0x1a   :  { %140 = vmatpush.bf16.msra.mxu0 %v231_v13 }
  0x1b   :  { %248 = vmatpush.bf16.msra.mxu2 %v231_v13 }
  0x1e   :  { %141 = vmatpush.bf16.msra.mxu0 %v230_v14 }
  0x1f   :  { %249 = vmatpush.bf16.msra.mxu2 %v230_v14 }
  0x21   :  { %142 = vmatmul.bf16.vlgmr.msra.gmra.mxu0 %v23_v21 }
  0x22   :  { %147 = vmatmul.bf16.vlgmr.msra.gmra.mxu2 %v25_v22  ;;  %229 = vmatmul.msk.bf16.gmra.mxu1 %vm127_vm0, %v26_v23 }
  0x8f   :  { %v162_v24 = vpop.f32.mrf.mxu1 }
  0x97   :  { %v164_v25 = vpop.f32.mrf.mxu1 }
  0x9e   :  { %v143_v27 = vpop.f32.mrf.mxu0 }
  0x9f   :  { %v144_v28 = vadd.f32 %v250_v26, %v143_v27  ;;  %v167_v30 = vpop.f32.mrf.mxu1 }
  0xa1   :  { %v163_v29 = vadd.f32 %v162_v24, %v144_v28 }
  0xa3   :  { %172 = vst [vmem:[%s351_s3] sm:$0xff] %v163_v29 }
  0xa5   :  { %v148_v31 = vpop.f32.mrf.mxu2 }
  0xa6   :  { %v149_v32 = vadd.f32 %v250_v26, %v148_v31  ;;  %v145_v33 = vpop.f32.mrf.mxu0 }
  0xa7   :  { %v146_v34 = vadd.f32 %v250_v26, %v145_v33  ;;  %v169_v39 = vpop.f32.mrf.mxu1 }
  0xa8   :  { %v168_v35 = vadd.f32 %v167_v30, %v149_v32 }
  0xa9   :  { %v165_v36 = vadd.f32 %v164_v25, %v146_v34 }
  0xaa   :  { %174 = vst [vmem:[%s351_s3 + $0x10] sm:$0xff] %v168_v35 }
  0xab   :  { %173 = vst [vmem:[%s351_s3 + $0x8] sm:$0xff] %v165_v36 }
  0xad   :  { %v150_v37 = vpop.f32.mrf.mxu2 }
  0xae   :  { %v151_v38 = vadd.f32 %v250_v26, %v150_v37 }
  0xb0   :  { %v170_v40 = vadd.f32 %v169_v39, %v151_v38 }
  0xb2   :  { %175 = vst [vmem:[%s351_s3 + $0x18] sm:$0xff] %v170_v40 }

// kernel: vit_forward.18
= control target key start
LH: loop header
LB: loop body
LE: loop exit
PB: predicated region body
PF: predicated region fallthrough
CT: control target
= control target key end

     0   :  { %vm27_vm0 = vcmask 1041408   ;;  %v171_v6 = vmov 128.0   ;;  %s250_s0 = inlined_call_operand.vmem [shape: f32[34,128], index: 0, kind: input, shape index: {}]   ;;  %s251_s1 = inlined_call_operand.vmem [shape: f32[1,128], index: 1, kind: input, shape index: {}]   ;;  %s252_s2 = inlined_call_operand.vmem [shape: f32[1,128], index: 2, kind: input, shape index: {}]   ;;  %s253_s3 = inlined_call_operand.vmem [shape: f32[34,128], index: 3, kind: output, shape index: {}]  }
   0x1   :  { %v15_v0 = vld [vmem:[%s250_s0 + $0x8] sm:$0xff]  ;;  %v18_v1 = vld [vmem:[%s250_s0 + $0x20] sm:$0x3]  ;;  %v17_v3 = vld [vmem:[%s250_s0 + $0x18] sm:$0xff]  ;;  %159 = vrcp.f32 %v171_v6 }
   0x2   :  { %21 = vadd.xlane.f32.xlu1 %v15_v0  ;;  %v28_v2 = vsel %vm27_vm0, %v18_v1, 0.0  ;;  %25 = vadd.xlane.f32.xlu2 %v17_v3  ;;  %v16_v4 = vld [vmem:[%s250_s0 + $0x10] sm:$0xff]  ;;  %v14_v5 = vld [vmem:[%s250_s0] sm:$0xff] }
   0x3   :  { %29 = vadd.xlane.f32.xlu0 %v28_v2  ;;  %v157_v59 = vld [vmem:[%s251_s1] ss:$0 sm:$0xff] }
   0x7   :  { %v160_v7 = vpop.eup %159 }
   0x8   :  { %v32_v8 = vmul.f32 128.0, %v160_v7  ;;  %vm36_vm1 = vweird.f32 %v160_v7 }
   0xa   :  { %23 = vadd.xlane.f32.xlu1 %v16_v4  ;;  %v33_v9 = vsub.f32 1.0, %v32_v8 }
   0xb   :  { %19 = vadd.xlane.f32.xlu0 %v14_v5 }
   0xc   :  { %v34_v10 = vmul.f32 %v160_v7, %v33_v9 }
   0xe   :  { %v35_v11 = vadd.f32 %v160_v7, %v34_v10 }
  0x10   :  { %v37_v12 = vsel %vm36_vm1, %v160_v7, %v35_v11 }
  0x75   :  { %v22_v13 = vpop.xlane.xlu1 %21  ;;  %v26_v23 = vpop.xlane.xlu2 %25 }
  0x76   :  { %v39_v14 = vmul.f32 %v37_v12, %v22_v13  ;;  %v30_v15 = vpop.xlane.xlu0 %29  ;;  %v41_v28 = vmul.f32 %v37_v12, %v26_v23 }
  0x77   :  { %v42_v16 = vmul.f32 %v37_v12, %v30_v15 }
  0x78   :  { %v44_v17 = vsub.f32 %v15_v0, %v39_v14  ;;  %v221_v32 = vsub.f32 %v17_v3, %v41_v28  ;;  %v158_v0 = vld [vmem:[%s252_s2] ss:$0 sm:$0xff] }
  0x79   :  { %v208_v19 = vsub.f32 %v18_v1, %v42_v16 }
  0x7a   :  { %v49_v18 = vmul.f32 %v44_v17, %v44_v17  ;;  %v51_v33 = vmul.f32 %v221_v32, %v221_v32 }
  0x7b   :  { %v52_v25 = vmul.f32 %v208_v19, %v208_v19 }
  0x7c   :  { %55 = vadd.xlane.f32.xlu0 %v49_v18 }
  0x7d   :  { %v24_v20 = vpop.xlane.xlu1 %23  ;;  %v61_v30 = vsel %vm27_vm0, %v52_v25, 0.0 }
  0x7e   :  { %v40_v21 = vmul.f32 %v37_v12, %v24_v20  ;;  %v20_v22 = vpop.xlane.xlu0 %19 }
  0x7f   :  { %v38_v24 = vmul.f32 %v37_v12, %v20_v22 }
  0x80   :  { %v212_v26 = vsub.f32 %v16_v4, %v40_v21 }
  0x81   :  { %v214_v27 = vsub.f32 %v14_v5, %v38_v24 }
  0x82   :  { %v50_v29 = vmul.f32 %v212_v26, %v212_v26 }
  0x83   :  { %v48_v31 = vmul.f32 %v214_v27, %v214_v27 }
  0x84   :  { %57 = vadd.xlane.f32.xlu1 %v50_v29  ;;  %62 = vadd.xlane.f32.xlu0 %v61_v30 }
  0x85   :  { %53 = vadd.xlane.f32.xlu2 %v48_v31 }
  0x8d   :  { %59 = vadd.xlane.f32.xlu2 %v51_v33 }
  0xef   :  { %v56_v34 = vpop.xlane.xlu0 %55 }
  0xf0   :  { %v65_v35 = vmul.f32 %v56_v34, %v37_v12 }
  0xf2   :  { %v70_v36 = vadd.f32 1e-06, %v65_v35 }
  0xf4   :  { %161 = vrsqrt.f32 %v70_v36  ;;  %vm90_vm2 = vweird.f32 %v70_v36 }
  0xf7   :  { %v58_v37 = vpop.xlane.xlu1 %57  ;;  %v63_v38 = vpop.xlane.xlu0 %62 }
  0xf8   :  { %v66_v39 = vmul.f32 %v58_v37, %v37_v12  ;;  %v68_v40 = vmul.f32 %v63_v38, %v37_v12  ;;  %v54_v41 = vpop.xlane.xlu2 %53 }
  0xf9   :  { %v64_v42 = vmul.f32 %v54_v41, %v37_v12 }
  0xfa   :  { %v162_v43 = vpop.eup %161  ;;  %v71_v44 = vadd.f32 1e-06, %v66_v39  ;;  %v73_v45 = vadd.f32 1e-06, %v68_v40 }
  0xfb   :  { %v85_v46 = vmul.f32 %v162_v43, %v70_v36  ;;  %v69_v47 = vadd.f32 1e-06, %v64_v42  ;;  %vm91_vm3 = vweird.f32 %v162_v43 }
  0xfc   :  { %163 = vrsqrt.f32 %v71_v44  ;;  %vm92_vm4 = vmor %vm90_vm2, %vm91_vm3  ;;  %vm100_vm5 = vweird.f32 %v71_v44  ;;  %vm120_vm10 = vweird.f32 %v73_v45 }
  0xfd   :  { %v86_v48 = vmul.f32 %v162_v43, %v85_v46  ;;  %165 = vrsqrt.f32 %v73_v45  ;;  %vm80_vm12 = vweird.f32 %v69_v47 }
  0xfe   :  { %167 = vrsqrt.f32 %v69_v47 }
  0xff   :  { %v87_v49 = vmul.f32 0.5, %v86_v48 }
 0x100   :  { %v60_v50 = vpop.xlane.xlu2 %59 }
 0x101   :  { %v88_v51 = vsub.f32 1.5, %v87_v49  ;;  %v67_v52 = vmul.f32 %v60_v50, %v37_v12 }
 0x102   :  { %v164_v53 = vpop.eup %163 }
 0x103   :  { %v166_v54 = vpop.eup %165  ;;  %v89_v55 = vmul.f32 %v162_v43, %v88_v51  ;;  %v95_v56 = vmul.f32 %v164_v53, %v71_v44  ;;  %v72_v57 = vadd.f32 1e-06, %v67_v52  ;;  %vm101_vm6 = vweird.f32 %v164_v53 }
 0x104   :  { %v168_v58 = vpop.eup %167  ;;  %v115_v60 = vmul.f32 %v166_v54, %v73_v45  ;;  %vm121_vm7 = vweird.f32 %v166_v54  ;;  %vm102_vm9 = vmor %vm100_vm5, %vm101_vm6 }
 0x105   :  { %v93_v61 = vsel %vm92_vm4, %v162_v43, %v89_v55  ;;  %v96_v62 = vmul.f32 %v164_v53, %v95_v56  ;;  %v75_v63 = vmul.f32 %v168_v58, %v69_v47  ;;  %169 = vrsqrt.f32 %v72_v57  ;;  %vm122_vm11 = vmor %vm120_vm10, %vm121_vm7 }
 0x106   :  { %v125_v1 = vmul.f32 %v93_v61, %v44_v17  ;;  %v116_v2 = vmul.f32 %v166_v54, %v115_v60  ;;  %vm81_vm8 = vweird.f32 %v168_v58  ;;  %vm110_vm15 = vweird.f32 %v72_v57 }
 0x107   :  { %v97_v3 = vmul.f32 0.5, %v96_v62  ;;  %v76_v4 = vmul.f32 %v168_v58, %v75_v63  ;;  %vm82_vm13 = vmor %vm80_vm12, %vm81_vm8 }
 0x108   :  { %v134_v5 = vmul.f32 %v157_v59, %v125_v1  ;;  %v117_v6 = vmul.f32 0.5, %v116_v2 }
 0x109   :  { %v98_v7 = vsub.f32 1.5, %v97_v3  ;;  %v77_v8 = vmul.f32 0.5, %v76_v4 }
 0x10a   :  { %v143_v9 = vadd.f32 %v158_v0, %v134_v5  ;;  %v118_v10 = vsub.f32 1.5, %v117_v6 }
 0x10b   :  { %v99_v11 = vmul.f32 %v164_v53, %v98_v7  ;;  %v78_v12 = vsub.f32 1.5, %v77_v8  ;;  %v170_v13 = vpop.eup %169 }
 0x10c   :  { %148 = vst [vmem:[%s253_s3 + $0x8] sm:$0xff] %v143_v9  ;;  %v119_v14 = vmul.f32 %v166_v54, %v118_v10  ;;  %v105_v17 = vmul.f32 %v170_v13, %v72_v57  ;;  %vm111_vm14 = vweird.f32 %v170_v13 }
 0x10d   :  { %v103_v15 = vsel %vm102_vm9, %v164_v53, %v99_v11  ;;  %v79_v16 = vmul.f32 %v168_v58, %v78_v12  ;;  %vm112_vm0 = vmor %vm110_vm15, %vm111_vm14 }
 0x10e   :  { %v126_v18 = vmul.f32 %v103_v15, %v212_v26  ;;  %v123_v20 = vsel %vm122_vm11, %v166_v54, %v119_v14  ;;  %v106_v23 = vmul.f32 %v170_v13, %v105_v17 }
 0x10f   :  { %v128_v21 = vmul.f32 %v123_v20, %v208_v19  ;;  %v83_v22 = vsel %vm82_vm13, %v168_v58, %v79_v16 }
 0x110   :  { %v135_v24 = vmul.f32 %v157_v59, %v126_v18  ;;  %v124_v25 = vmul.f32 %v83_v22, %v214_v27  ;;  %v107_v29 = vmul.f32 0.5, %v106_v23 }
 0x111   :  { %v137_v28 = vmul.f32 %v157_v59, %v128_v21 }
 0x112   :  { %v144_v30 = vadd.f32 %v158_v0, %v135_v24  ;;  %v133_v31 = vmul.f32 %v157_v59, %v124_v25  ;;  %v108_v34 = vsub.f32 1.5, %v107_v29 }
 0x113   :  { %v146_v33 = vadd.f32 %v158_v0, %v137_v28 }
 0x114   :  { %149 = vst [vmem:[%s253_s3 + $0x10] sm:$0xff] %v144_v30  ;;  %v142_v26 = vadd.f32 %v158_v0, %v133_v31  ;;  %v109_v19 = vmul.f32 %v170_v13, %v108_v34 }
 0x115   :  { %151 = vst [vmem:[%s253_s3 + $0x20] sm:$0x3] %v146_v33 }
 0x116   :  { %147 = vst [vmem:[%s253_s3] sm:$0xff] %v142_v26  ;;  %v113_v27 = vsel %vm112_vm0, %v170_v13, %v109_v19 }
 0x117   :  { %v127_v35 = vmul.f32 %v113_v27, %v221_v32 }
 0x119   :  { %v136_v36 = vmul.f32 %v157_v59, %v127_v35 }
 0x11b   :  { %v145_v37 = vadd.f32 %v158_v0, %v136_v36 }
 0x11d   :  { %150 = vst [vmem:[%s253_s3 + $0x18] sm:$0xff] %v145_v37 }

// kernel: vit_forward.19
= control target key start
LH: loop header
LB: loop body
LE: loop exit
PB: predicated region body
PF: predicated region fallthrough
CT: control target
= control target key end

     0   :  { %s633_s1 = inlined_call_operand.vmem [shape: bf16[128,384], index: 1, kind: input, shape index: {}]   ;;  %s634_s0 = inlined_call_operand.vmem [shape: f32[34,128], index: 0, kind: input, shape index: {}]   ;;  %s635_s2 = inlined_call_operand.vmem [shape: f32[1,384], index: 2, kind: input, shape index: {}]   ;;  %s636_s3 = inlined_call_operand.vmem [shape: f32[34,384], index: 3, kind: output, shape index: {}]  }
   0x1   :  { %v395_v0 = vld [vmem:[%s633_s1 + $0xac] sm:$0xf]  ;;  %v366_v1 = vld [vmem:[%s633_s1 + $0xb4] sm:$0xf0]  ;;  %v372_v2 = vld [vmem:[%s633_s1 + $0xb0] sm:$0xf] }
   0x2   :  { %v369_v3 = vor.u32 %v395_v0, %v366_v1  ;;  %v397_v4 = vld [vmem:[%s633_s1 + $0xb8] sm:$0xf0]  ;;  %v392_v5 = vld [vmem:[%s633_s1 + $0x94] sm:$0xf]  ;;  %v354_v6 = vld [vmem:[%s633_s1 + $0x9c] sm:$0xf0] }
   0x3   :  { %v373_v7 = vor.u32 %v397_v4, %v372_v2  ;;  %v360_v8 = vld [vmem:[%s633_s1 + $0x98] sm:$0xf]  ;;  %v394_v9 = vld [vmem:[%s633_s1 + $0xa0] sm:$0xf0]  ;;  %v364_v10 = vld [vmem:[%s633_s1 + $0xa8] sm:$0xf]  ;;  %v357_v11 = vor.u32 %v392_v5, %v354_v6 }
   0x4   :  { %213 = vmatpush.bf16.msra.mxu1 %v369_v3  ;;  %v396_v12 = vld [vmem:[%s633_s1 + $0xb0] sm:$0xf0]  ;;  %v361_v13 = vor.u32 %v394_v9, %v360_v8  ;;  %v389_v15 = vld [vmem:[%s633_s1 + $0x7c] sm:$0xf]  ;;  %v342_v16 = vld [vmem:[%s633_s1 + $0x84] sm:$0xf0] }
   0x5   :  { %236 = vmatpush.bf16.msra.mxu2 %v373_v7  ;;  %v365_v14 = vor.u32 %v396_v12, %v364_v10  ;;  %v352_v17 = vld [vmem:[%s633_s1 + $0x90] sm:$0xf]  ;;  %v348_v18 = vld [vmem:[%s633_s1 + $0x80] sm:$0xf]  ;;  %v391_v19 = vld [vmem:[%s633_s1 + $0x88] sm:$0xf0]  ;;  %v345_v22 = vor.u32 %v389_v15, %v342_v16 }
   0x6   :  { %v393_v20 = vld [vmem:[%s633_s1 + $0x98] sm:$0xf0]  ;;  %v340_v23 = vld [vmem:[%s633_s1 + $0x78] sm:$0xf]  ;;  %v390_v24 = vld [vmem:[%s633_s1 + $0x80] sm:$0xf0]  ;;  %v349_v25 = vor.u32 %v391_v19, %v348_v18 }
   0x7   :  { %398 = vmatpush.bf16.msra.mxu3 %v365_v14  ;;  %v353_v21 = vor.u32 %v393_v20, %v352_v17  ;;  %190 = vmatpush.bf16.msra.mxu0 %v365_v14  ;;  %v386_v26 = vld [vmem:[%s633_s1 + $0x64] sm:$0xf]  ;;  %v330_v27 = vld [vmem:[%s633_s1 + $0x6c] sm:$0xf0]  ;;  %v336_v28 = vld [vmem:[%s633_s1 + $0x68] sm:$0xf]  ;;  %v341_v30 = vor.u32 %v390_v24, %v340_v23 }
   0x8   :  { %214 = vmatpush.bf16.msra.mxu1 %v357_v11  ;;  %v388_v29 = vld [vmem:[%s633_s1 + $0x70] sm:$0xf0]  ;;  %v333_v31 = vor.u32 %v386_v26, %v330_v27  ;;  %v328_v32 = vld [vmem:[%s633_s1 + $0x60] sm:$0xf]  ;;  %v387_v33 = vld [vmem:[%s633_s1 + $0x68] sm:$0xf0] }
   0x9   :  { %237 = vmatpush.bf16.msra.mxu2 %v361_v13  ;;  %v337_v34 = vor.u32 %v388_v29, %v336_v28  ;;  %v383_v35 = vld [vmem:[%s633_s1 + $0x4c] sm:$0xf]  ;;  %v318_v36 = vld [vmem:[%s633_s1 + $0x54] sm:$0xf0]  ;;  %v324_v37 = vld [vmem:[%s633_s1 + $0x50] sm:$0xf]  ;;  %v329_v39 = vor.u32 %v387_v33, %v328_v32 }
   0xa   :  { %v385_v38 = vld [vmem:[%s633_s1 + $0x58] sm:$0xf0]  ;;  %v321_v40 = vor.u32 %v383_v35, %v318_v36  ;;  %v316_v41 = vld [vmem:[%s633_s1 + $0x48] sm:$0xf]  ;;  %v384_v42 = vld [vmem:[%s633_s1 + $0x50] sm:$0xf0] }
   0xb   :  { %399 = vmatpush.bf16.msra.mxu3 %v353_v21  ;;  %191 = vmatpush.bf16.msra.mxu0 %v353_v21  ;;  %v325_v43 = vor.u32 %v385_v38, %v324_v37  ;;  %v380_v44 = vld [vmem:[%s633_s1 + $0x34] sm:$0xf]  ;;  %v306_v45 = vld [vmem:[%s633_s1 + $0x3c] sm:$0xf0]  ;;  %v312_v46 = vld [vmem:[%s633_s1 + $0x38] sm:$0xf]  ;;  %v317_v48 = vor.u32 %v384_v42, %v316_v41 }
   0xc   :  { %215 = vmatpush.bf16.msra.mxu1 %v345_v22  ;;  %v382_v47 = vld [vmem:[%s633_s1 + $0x40] sm:$0xf0]  ;;  %v309_v49 = vor.u32 %v380_v44, %v306_v45  ;;  %v304_v50 = vld [vmem:[%s633_s1 + $0x30] sm:$0xf]  ;;  %v381_v51 = vld [vmem:[%s633_s1 + $0x38] sm:$0xf0] }
   0xd   :  { %238 = vmatpush.bf16.msra.mxu2 %v349_v25  ;;  %v313_v52 = vor.u32 %v382_v47, %v312_v46  ;;  %v377_v53 = vld [vmem:[%s633_s1 + $0x1c] sm:$0xf]  ;;  %v294_v54 = vld [vmem:[%s633_s1 + $0x24] sm:$0xf0]  ;;  %v300_v55 = vld [vmem:[%s633_s1 + $0x20] sm:$0xf]  ;;  %v305_v57 = vor.u32 %v381_v51, %v304_v50 }
   0xe   :  { %v379_v56 = vld [vmem:[%s633_s1 + $0x28] sm:$0xf0]  ;;  %v297_v58 = vor.u32 %v377_v53, %v294_v54  ;;  %v292_v59 = vld [vmem:[%s633_s1 + $0x18] sm:$0xf]  ;;  %v378_v60 = vld [vmem:[%s633_s1 + $0x20] sm:$0xf0] }
   0xf   :  { %400 = vmatpush.bf16.msra.mxu3 %v341_v30  ;;  %192 = vmatpush.bf16.msra.mxu0 %v341_v30  ;;  %v301_v61 = vor.u32 %v379_v56, %v300_v55  ;;  %v374_v62 = vld [vmem:[%s633_s1 + $0x4] sm:$0xf]  ;;  %v282_v63 = vld [vmem:[%s633_s1 + $0xc] sm:$0xf0]  ;;  %v288_v0 = vld [vmem:[%s633_s1 + $0x8] sm:$0xf]  ;;  %v293_v3 = vor.u32 %v378_v60, %v292_v59 }
  0x10   :  { %216 = vmatpush.bf16.msra.mxu1 %v333_v31  ;;  %v376_v1 = vld [vmem:[%s633_s1 + $0x10] sm:$0xf0]  ;;  %v14_v2 = vld [vmem:[%s634_s0] sm:$0xff]  ;;  %v285_v4 = vor.u32 %v374_v62, %v282_v63  ;;  %v15_v5 = vld [vmem:[%s634_s0 + $0x8] sm:$0xff] }
  0x11   :  { %239 = vmatpush.bf16.msra.mxu2 %v337_v34  ;;  %v280_v6 = vld [vmem:[%s633_s1] sm:$0xf]  ;;  %v375_v7 = vld [vmem:[%s633_s1 + $0x8] sm:$0xf0]  ;;  %v289_v8 = vor.u32 %v376_v1, %v288_v0  ;;  %v19_v9 = vpack.c.bf16 %v15_v5, %v14_v2  ;;  %v16_v11 = vld [vmem:[%s634_s0 + $0x10] sm:$0xff] }
  0x12   :  { %v281_v10 = vor.u32 %v375_v7, %v280_v6  ;;  %v17_v12 = vld [vmem:[%s634_s0 + $0x18] sm:$0xff]  ;;  %v18_v14 = vld [vmem:[%s634_s0 + $0x20] sm:$0x3] }
  0x13   :  { %401 = vmatpush.bf16.msra.mxu3 %v329_v39  ;;  %193 = vmatpush.bf16.msra.mxu0 %v329_v39  ;;  %v20_v13 = vpack.c.bf16 %v17_v12, %v16_v11  ;;  %v21_v15 = vpack.c.bf16 %v18_v14, %v18_v14  ;;  %v54_v16 = vld [vmem:[%s635_s2] sm:$0x7] }
  0x14   :  { %217 = vmatpush.bf16.msra.mxu1 %v321_v40  ;;  %v57_v17 = vperm.slane %v54_v16, 1  ;;  %v56_v20 = vperm.slane %v54_v16, 0  ;;  %v58_v21 = vperm.slane %v54_v16, 2 }
  0x15   :  { %240 = vmatpush.bf16.msra.mxu2 %v325_v43 }
  0x17   :  { %402 = vmatpush.bf16.msra.mxu3 %v317_v48  ;;  %194 = vmatpush.bf16.msra.mxu0 %v317_v48 }
  0x18   :  { %218 = vmatpush.bf16.msra.mxu1 %v309_v49 }
  0x19   :  { %241 = vmatpush.bf16.msra.mxu2 %v313_v52 }
  0x1b   :  { %403 = vmatpush.bf16.msra.mxu3 %v305_v57  ;;  %195 = vmatpush.bf16.msra.mxu0 %v305_v57 }
  0x1c   :  { %219 = vmatpush.bf16.msra.mxu1 %v297_v58 }
  0x1d   :  { %242 = vmatpush.bf16.msra.mxu2 %v301_v61 }
  0x1f   :  { %404 = vmatpush.bf16.msra.mxu3 %v293_v3  ;;  %196 = vmatpush.bf16.msra.mxu0 %v293_v3 }
  0x20   :  { %220 = vmatpush.bf16.msra.mxu1 %v285_v4 }
  0x21   :  { %243 = vmatpush.bf16.msra.mxu2 %v289_v8 }
  0x23   :  { %221 = vmatmul.bf16.vlgmr.msra.gmra.mxu1 %v19_v9  ;;  %405 = vmatpush.bf16.msra.mxu3 %v281_v10 }
  0x24   :  { %244 = vmatmul.bf16.vlgmr.msra.gmra.mxu2 %v19_v9  ;;  %197 = vmatpush.bf16.msra.mxu0 %v281_v10 }
  0x26   :  { %203 = vmatmul.bf16.vlgmr.msra.gmra.mxu3 %v20_v13 }
  0x27   :  { %198 = vmatmul.bf16.vlgmr.msra.gmra.mxu0 %v19_v9 }
  0x33   :  { %226 = vmatmul.bf16.gmra.mxu1 %v20_v13 }
  0x34   :  { %249 = vmatmul.bf16.gmra.mxu2 %v20_v13 }
  0x36   :  { %208 = vmatmul.bf16.gmra.mxu3 %v21_v15 }
  0x43   :  { %231 = vmatmul.bf16.gmra.mxu1 %v21_v15 }
  0x44   :  { %254 = vmatmul.bf16.gmra.mxu2 %v21_v15 }
  0xa0   :  { %v222_v18 = vpop.f32.mrf.mxu1 }
  0xa1   :  { %v223_v19 = vadd.f32 %v222_v18, %v57_v17 }
  0xa3   :  { %260 = vst [vmem:[%s636_s3 + $0x8] sm:$0xff] %v223_v19 }
  0xa4   :  { %v199_v22 = vpop.f32.mrf.mxu0 }
  0xa5   :  { %v200_v23 = vadd.f32 %v199_v22, %v56_v20 }
  0xa7   :  { %v245_v24 = vpop.f32.mrf.mxu2  ;;  %259 = vst [vmem:[%s636_s3] sm:$0xff] %v200_v23 }
  0xa8   :  { %v246_v25 = vadd.f32 %v245_v24, %v58_v21  ;;  %v224_v26 = vpop.f32.mrf.mxu1 }
  0xa9   :  { %v225_v27 = vadd.f32 %v224_v26, %v57_v17  ;;  %v204_v28 = vpop.f32.mrf.mxu3 }
  0xaa   :  { %261 = vst [vmem:[%s636_s3 + $0x10] sm:$0xff] %v246_v25  ;;  %v205_v29 = vadd.f32 %v204_v28, %v56_v20 }
  0xab   :  { %263 = vst [vmem:[%s636_s3 + $0x20] sm:$0xff] %v225_v27 }
  0xac   :  { %265 = vst [vmem:[%s636_s3 + $0x30] sm:$0xff] %v205_v29  ;;  %v201_v30 = vpop.f32.mrf.mxu0 }
  0xad   :  { %v202_v31 = vadd.f32 %v201_v30, %v56_v20 }
  0xaf   :  { %v247_v32 = vpop.f32.mrf.mxu2  ;;  %262 = vst [vmem:[%s636_s3 + $0x18] sm:$0xff] %v202_v31 }
  0xb0   :  { %v248_v33 = vadd.f32 %v247_v32, %v58_v21  ;;  %v227_v34 = vpop.f32.mrf.mxu1 }
  0xb1   :  { %v228_v35 = vadd.f32 %v227_v34, %v57_v17  ;;  %v206_v36 = vpop.f32.mrf.mxu3 }
  0xb2   :  { %264 = vst [vmem:[%s636_s3 + $0x28] sm:$0xff] %v248_v33  ;;  %v207_v37 = vadd.f32 %v206_v36, %v56_v20 }
  0xb3   :  { %266 = vst [vmem:[%s636_s3 + $0x38] sm:$0xff] %v228_v35 }
  0xb4   :  { %268 = vst [vmem:[%s636_s3 + $0x48] sm:$0xff] %v207_v37 }
  0xb7   :  { %v250_v38 = vpop.f32.mrf.mxu2 }
  0xb8   :  { %v251_v39 = vadd.f32 %v250_v38, %v58_v21  ;;  %v229_v40 = vpop.f32.mrf.mxu1 }
  0xb9   :  { %v230_v41 = vadd.f32 %v229_v40, %v57_v17  ;;  %v209_v42 = vpop.f32.mrf.mxu3 }
  0xba   :  { %267 = vst [vmem:[%s636_s3 + $0x40] sm:$0xff] %v251_v39  ;;  %v210_v43 = vadd.f32 %v209_v42, %v56_v20 }
  0xbb   :  { %269 = vst [vmem:[%s636_s3 + $0x50] sm:$0xff] %v230_v41 }
  0xbc   :  { %271 = vst [vmem:[%s636_s3 + $0x60] sm:$0x3] %v210_v43 }
  0xbf   :  { %v252_v44 = vpop.f32.mrf.mxu2 }
  0xc0   :  { %v253_v45 = vadd.f32 %v252_v44, %v58_v21  ;;  %v232_v46 = vpop.f32.mrf.mxu1 }
  0xc1   :  { %v233_v47 = vadd.f32 %v232_v46, %v57_v17  ;;  %v211_v48 = vpop.f32.mrf.mxu3 }
  0xc2   :  { %270 = vst [vmem:[%s636_s3 + $0x58] sm:$0xff] %v253_v45 }
  0xc3   :  { %272 = vst [vmem:[%s636_s3 + $0x68] sm:$0x3] %v233_v47 }
  0xc7   :  { %v255_v49 = vpop.f32.mrf.mxu2 }
  0xc8   :  { %v256_v50 = vadd.f32 %v255_v49, %v58_v21  ;;  %v234_v51 = vpop.f32.mrf.mxu1 }
  0xca   :  { %273 = vst [vmem:[%s636_s3 + $0x70] sm:$0x3] %v256_v50 }
  0xcf   :  { %v257_v52 = vpop.f32.mrf.mxu2 }

// kernel: vit_forward.20
= control target key start
LH: loop header
LB: loop body
LE: loop exit
PB: predicated region body
PF: predicated region fallthrough
CT: control target
= control target key end

     0   :  { %s564_s12 = smov 0   ;;  %s611_s0 = inlined_call_operand.vmem [shape: bf16[8,17,32], index: 0, kind: input, shape index: {}]   ;;  %s612_s1 = inlined_call_operand.vmem [shape: bf16[8,17,32], index: 1, kind: input, shape index: {}]   ;;  %s613_s2 = inlined_call_operand.vmem [shape: bf16[8,17,32], index: 2, kind: input, shape index: {}]   ;;  %s614_s3 = inlined_call_operand.vmem [shape: f32[8,17,32], index: 3, kind: output, shape index: {}]  }
   0x1 LB: > { %s478_s13 = sadd.s32 4294967295, %s541_s12   ;;  %p482_p0 = scmp.ge.s32.totalorder %s541_s12, 1  ;;  %s541_s12 = sphi %s564_s12, %s13_s12  }
   0x2   : > { %p157_p1 = scmp.lt.s32.totalorder %s541_s12, 9 }
   0x4   : > { %p158_p2 = pnand %p482_p0, %p157_p1 }
   0x5   : > { %p191_p3 = scmp.lt.s32.totalorder (!%p158_p2), %s478_s13, 7 }
   0x6   : > { %161 = sbr.rel (%p158_p2) target bundleno = 449 (0x1c1), region = 32 }
   0xb   : > { %s616_s13 = smov (!%p191_p3, %s478_s13), 7  ;;  %vm234_vm0 = vcmask 261120   ;;  %vm275_vm1 = vcmask 131072   ;;  %vm268_vm2 = vcmask 138240   ;;  %vm326_vm3 = vcmask 1040384  }
   0xc   : > { %s575_s14 = smul.u32 12, %s616_s13  ;;  %v543_v23 = vmov 0   ;;  %vm397_vm14 = vcmask 253952  }
   0xd   : > { %v328_v24 = vsel %vm326_vm3, 65535, %v543_v23  ;;  %s513_s24 = smul.u32 24, %s616_s13 }
   0xe   : > { %s200_s17 = scalar_lea.vmem %s612_s1, %s575_s14  ;;  %s195_s20 = scalar_lea.vmem %s611_s0, %s575_s14 }
   0xf   : > { %v217_v0 = vld [vmem:[%s200_s17 + $0x8] sm:$0x1]  ;;  %v506_v4 = vld [vmem:[%s200_s17] sm:$0xff]  ;;  %s205_s23 = scalar_lea.vmem %s613_s2, %s575_s14  ;;  %s210_s27 = scalar_lea.vmem %s614_s3, %s513_s24 }
  0x10   : > { %v231_v1 = vunpack.c.l.b16 %v217_v0  ;;  %v214_v5 = vld [vmem:[%s195_s20 + $0x8] sm:$0x1]  ;;  %v242_v6 = vsel %vm234_vm0, %v506_v4, 0  ;;  %v505_v8 = vld [vmem:[%s195_s20] sm:$0xff] }
  0x11   : > { %v223_v7 = vunpack.c.l.b16 %v214_v5  ;;  %v302_v20 = vld [vmem:[%s205_s23 + $0x8] sm:$0x1]  ;;  %v507_v26 = vld [vmem:[%s205_s23] sm:$0xff] }
  0x12   : > { %v233_v2 = vpack.c.b16 %v231_v1, %v231_v1  ;;  %v316_v21 = vunpack.c.l.b16 %v302_v20 }
  0x13   : > { %v225_v9 = vpack.c.b16 %v223_v7, %v223_v7 }
  0x14   : > { %v245_v3 = vsel %vm234_vm0, %v233_v2, 0  ;;  %v318_v22 = vpack.c.b16 %v316_v21, %v316_v21 }
  0x15   : > { %253 = vmatpush.bf16.xpose.msra.mxu0 %v245_v3  ;;  %508 = vmatpush.bf16.xpose.msra.mxu2 %v245_v3 }
  0x16   : > { %v330_v25 = vand.u32 %v328_v24, %v318_v22 }
  0x18   : > { %510 = vmatpush.bf16.msra.mxu3 %v330_v25  ;;  %338 = vmatpush.bf16.msra.mxu1 %v330_v25 }
  0x1c   : > { %511 = vmatpush.bf16.msra.mxu3 %v507_v26  ;;  %339 = vmatpush.bf16.msra.mxu1 %v507_v26 }
  0x1d   : > { %254 = vmatpush.bf16.xpose.msra.mxu0 %v242_v6  ;;  %509 = vmatpush.bf16.xpose.msra.mxu2 %v242_v6 }
  0x24   : > { %495 = vmatmul.msk.bf16.vlgmr.msra.gmra.mxu0 %vm234_vm0, %v505_v8  ;;  %496 = vmatmul.msk.bf16.vlgmr.msra.gmra.mxu2 %vm234_vm0, %v225_v9 }
  0xa1   : > { %v256_v10 = vpop.f32.mrf.mxu0 }
  0xa2   : > { %v265_v17 = vmul.f32 0.17677669, %v256_v10 }
  0xa4   : > { %v269_v19 = vsel %vm268_vm2, %v265_v17, -inf }
  0xa7   : > { %v261_v11 = vpop.f32.mrf.mxu2 }
  0xa8   : > { %v267_v12 = vmul.f32 0.17677669, %v261_v11 }
  0xa9   : > { %v258_v13 = vpop.f32.mrf.mxu0 }
  0xaa   : > { %v266_v14 = vmul.f32 0.17677669, %v258_v13  ;;  %v276_v15 = vsel %vm275_vm1, %v267_v12, -inf }
  0xab   : > { %277 = vmax.xlane.f32.xlu0 %v276_v15 }
  0xac   : > { %v272_v16 = vsel %vm268_vm2, %v266_v14, -inf }
  0xad   : > { %273 = vmax.xlane.f32.xlu1 %v272_v16 }
  0xaf   : > { %v263_v18 = vpop.f32.mrf.mxu2 }
  0xb3   : > { %270 = vmax.xlane.f32.xlu0 %v269_v19 }
 0x11e   : > { %v278_v27 = vpop.xlane.xlu0 %277 }
 0x11f   : > { %v281_v28 = vsub.f32 %v267_v12, %v278_v27 }
 0x120   : > { %v274_v29 = vpop.xlane.xlu1 %273 }
 0x121   : > { %v286_v30 = vmul.f32 1.442695, %v281_v28  ;;  %v280_v31 = vsub.f32 %v266_v14, %v274_v29 }
 0x123   : > { %523 = vpow2.f32 %v286_v30  ;;  %v284_v32 = vmul.f32 1.442695, %v280_v31 }
 0x125   : > { %525 = vpow2.f32 %v284_v32 }
 0x126   : > { %v271_v33 = vpop.xlane.xlu0 %270 }
 0x127   : > { %v279_v34 = vsub.f32 %v265_v17, %v271_v33 }
 0x129   : > { %v524_v35 = vpop.eup %523  ;;  %v282_v36 = vmul.f32 1.442695, %v279_v34 }
 0x12a   : > { %v299_v37 = vpack.c.bf16 %v524_v35, %v524_v35  ;;  %v294_v46 = vsel %vm275_vm1, %v524_v35, 0.0 }
 0x12b   : > { %v526_v38 = vpop.eup %525  ;;  %527 = vpow2.f32 %v282_v36 }
 0x12c   : > { %v291_v39 = vsel %vm268_vm2, %v526_v38, 0.0  ;;  %v308_v40 = vunpack.c.l.b16 %v299_v37  ;;  %v298_v42 = vpack.c.bf16 %v526_v38, %v526_v38 }
 0x12d   : > { %292 = vadd.xlane.f32.xlu2 %v291_v39 }
 0x12e   : > { %v310_v41 = vpack.c.b16 %v308_v40, %v308_v40  ;;  %v307_v48 = vunpack.c.l.b16 %v298_v42 }
 0x130   : > { %502 = vmatmul.msk.bf16.vlgmr.msra.gmra.mxu3 %vm268_vm2, %v310_v41 }
 0x131   : > { %v528_v43 = vpop.eup %527 }
 0x132   : > { %v288_v44 = vsel %vm268_vm2, %v528_v43, 0.0  ;;  %v297_v45 = vpack.c.bf16 %v528_v43, %v528_v43 }
 0x133   : > { %289 = vadd.xlane.f32.xlu1 %v288_v44 }
 0x134   : > { %v306_v47 = vunpack.c.l.b16 %v297_v45 }
 0x135   : > { %295 = vadd.xlane.f32.xlu2 %v294_v46 }
 0x136   : > { %v309_v49 = vpack.c.b16 %v307_v48, %v306_v47 }
 0x138   : > { %501 = vmatmul.msk.bf16.vlgmr.msra.gmra.mxu1 %vm268_vm2, %v309_v49 }
 0x1a0   : > { %v293_v50 = vpop.xlane.xlu2 %292 }
 0x1a1   : > { %529 = vrcp.f32 %v293_v50  ;;  %vm370_vm12 = vweird.f32 %v293_v50  ;;  %v376_v14 = vand.u32 2147483648, %v293_v50  ;;  %v374_v17 = vand.u32 2147483647, %v293_v50 }
 0x1a3   : > { %v377_v22 = vor.u32 1.1754944e-38, %v376_v14  ;;  %vm375_vm1 = vcmp.eq.f32.partialorder %v374_v17, 8.507059e+37 }
 0x1a6   : > { %v290_v51 = vpop.xlane.xlu1 %289 }
 0x1a7   : > { %v530_v52 = vpop.eup %529  ;;  %531 = vrcp.f32 %v290_v51  ;;  %v361_v61 = vand.u32 2147483648, %v290_v51  ;;  %v359_v62 = vand.u32 2147483647, %v290_v51  ;;  %vm355_vm5 = vweird.f32 %v290_v51 }
 0x1a8   : > { %v296_v53 = vpop.xlane.xlu2 %295  ;;  %v366_v54 = vmul.f32 %v530_v52, %v293_v50  ;;  %vm371_vm9 = vweird.f32 %v530_v52 }
 0x1a9   : > { %533 = vrcp.f32 %v296_v53  ;;  %v391_v2 = vand.u32 2147483648, %v296_v53  ;;  %v389_v5 = vand.u32 2147483647, %v296_v53  ;;  %vm385_vm7 = vweird.f32 %v296_v53  ;;  %vm372_vm15 = vmor %vm370_vm12, %vm371_vm9 }
 0x1aa   : > { %v367_v56 = vsub.f32 1.0, %v366_v54  ;;  %v362_v8 = vor.u32 1.1754944e-38, %v361_v61  ;;  %vm360_vm10 = vcmp.eq.f32.partialorder %v359_v62, 8.507059e+37 }
 0x1ab   : > { %v392_v12 = vor.u32 1.1754944e-38, %v391_v2  ;;  %vm390_vm13 = vcmp.eq.f32.partialorder %v389_v5, 8.507059e+37 }
 0x1ac   : > { %v368_v1 = vmul.f32 %v530_v52, %v367_v56 }
 0x1ad   : > { %v532_v55 = vpop.eup %531 }
 0x1ae   : > { %v351_v57 = vmul.f32 %v532_v55, %v290_v51  ;;  %vm356_vm4 = vweird.f32 %v532_v55  ;;  %v369_v11 = vadd.f32 %v530_v52, %v368_v1 }
 0x1af   : > { %v534_v58 = vpop.eup %533  ;;  %vm357_vm8 = vmor %vm355_vm5, %vm356_vm4 }
 0x1b0   : > { %v352_v59 = vsub.f32 1.0, %v351_v57  ;;  %v381_v60 = vmul.f32 %v534_v58, %v296_v53  ;;  %vm386_vm6 = vweird.f32 %v534_v58  ;;  %v373_v20 = vsel %vm372_vm15, %v530_v52, %v369_v11 }
 0x1b1   : > { %vm387_vm11 = vmor %vm385_vm7, %vm386_vm6  ;;  %v378_v24 = vsel %vm375_vm1, %v377_v22, %v373_v20 }
 0x1b2   : > { %v353_v63 = vmul.f32 %v532_v55, %v352_v59  ;;  %v382_v0 = vsub.f32 1.0, %v381_v60 }
 0x1b3   : > { %v346_v3 = vpop.f32.mrf.mxu3 }
 0x1b4   : > { %v383_v4 = vmul.f32 %v534_v58, %v382_v0  ;;  %v354_v6 = vadd.f32 %v532_v55, %v353_v63 }
 0x1b5   : > { %v341_v7 = vpop.f32.mrf.mxu1 }
 0x1b6   : > { %v384_v9 = vadd.f32 %v534_v58, %v383_v4  ;;  %v358_v10 = vsel %vm357_vm8, %v532_v55, %v354_v6 }
 0x1b7   : > { %v363_v13 = vsel %vm360_vm10, %v362_v8, %v358_v10 }
 0x1b8   : > { %v388_v15 = vsel %vm387_vm11, %v534_v58, %v384_v9  ;;  %v364_v16 = vmul.f32 %v363_v13, %v341_v7 }
 0x1b9   : > { %v393_v18 = vsel %vm390_vm13, %v392_v12, %v388_v15 }
 0x1ba   : > { %v394_v19 = vmul.f32 %v393_v18, %v346_v3  ;;  %395 = vst.msk [vmem:[%s210_s27] sm:$0xff] %vm234_vm0, %v364_v16 }
 0x1bb   : > { %v348_v21 = vpop.f32.mrf.mxu3 }
 0x1bc   : > { %398 = vst.msk [vmem:[%s210_s27 + $0x10] sm:$0x1] %vm397_vm14, %v394_v19 }
 0x1bd   : > { %v343_v23 = vpop.f32.mrf.mxu1 }
 0x1be   : > { %v379_v25 = vmul.f32 %v378_v24, %v343_v23 }
 0x1c0   : > { %396 = vst.msk [vmem:[%s210_s27 + $0x8] sm:$0xff] %vm234_vm0, %v379_v25 }
 0x1c1 PF: > { %s13_s12 = sadd.s32 1, %s541_s12  }
 0x1c2   : > { %p10_p4 = scmp.ge.s32.totalorder %s13_s12, 10  }
 0x1c4   :  { %12 = sbr.rel (!%p10_p4) target bundleno = 1 (0x1), region = 68 }

// kernel: vit_forward.21
= control target key start
LH: loop header
LB: loop body
LE: loop exit
PB: predicated region body
PF: predicated region fallthrough
CT: control target
= control target key end

     0   :  { %s289_s1 = inlined_call_operand.vmem [shape: bf16[128,128], index: 1, kind: input, shape index: {}]   ;;  %s290_s2 = inlined_call_operand.vmem [shape: f32[1,128], index: 2, kind: input, shape index: {}]   ;;  %s291_s0 = inlined_call_operand.vmem [shape: f32[34,128], index: 0, kind: input, shape index: {}]   ;;  %s292_s3 = inlined_call_operand.vmem [shape: f32[34,128], index: 3, kind: input, shape index: {}]   ;;  %s293_s4 = inlined_call_operand.vmem [shape: f32[34,128], index: 4, kind: output, shape index: {}]  }
   0x1   :  { %v174_v0 = vld [vmem:[%s289_s1 + $0x38] sm:$0xff]  ;;  %v173_v1 = vld [vmem:[%s289_s1 + $0x30] sm:$0xff]  ;;  %v172_v2 = vld [vmem:[%s289_s1 + $0x28] sm:$0xff] }
   0x2   :  { %93 = vmatpush.bf16.msra.mxu0 %v174_v0  ;;  %175 = vmatpush.bf16.msra.mxu1 %v174_v0  ;;  %v171_v3 = vld [vmem:[%s289_s1 + $0x20] sm:$0xff]  ;;  %v170_v4 = vld [vmem:[%s289_s1 + $0x18] sm:$0xff]  ;;  %v169_v5 = vld [vmem:[%s289_s1 + $0x10] sm:$0xff] }
   0x3   :  { %176 = vmatpush.bf16.msra.mxu2 %v174_v0  ;;  %v168_v6 = vld [vmem:[%s289_s1 + $0x8] sm:$0xff]  ;;  %v167_v7 = vld [vmem:[%s289_s1] sm:$0xff]  ;;  %v19_v10 = vld [vmem:[%s291_s0 + $0x10] sm:$0xff] }
   0x4   :  { %v17_v8 = vld [vmem:[%s291_s0] sm:$0xff]  ;;  %v18_v9 = vld [vmem:[%s291_s0 + $0x8] sm:$0xff]  ;;  %v20_v11 = vld [vmem:[%s291_s0 + $0x18] sm:$0xff] }
   0x5   :  { %v21_v12 = vld [vmem:[%s291_s0 + $0x20] sm:$0x3]  ;;  %v22_v13 = vpack.c.bf16 %v18_v9, %v17_v8  ;;  %v23_v14 = vpack.c.bf16 %v20_v11, %v19_v10  ;;  %v118_v20 = vld [vmem:[%s292_s3 + $0x10] sm:$0xff]  ;;  %v117_v29 = vld [vmem:[%s292_s3 + $0x8] sm:$0xff] }
   0x6   :  { %94 = vmatpush.bf16.msra.mxu0 %v173_v1  ;;  %177 = vmatpush.bf16.msra.mxu1 %v173_v1  ;;  %v24_v15 = vpack.c.bf16 %v21_v12, %v21_v12  ;;  %v191_v16 = vld [vmem:[%s290_s2] ss:$0 sm:$0xff]  ;;  %v119_v31 = vld [vmem:[%s292_s3 + $0x18] sm:$0xff] }
   0x7   :  { %178 = vmatpush.bf16.msra.mxu2 %v173_v1  ;;  %v116_v18 = vld [vmem:[%s292_s3] sm:$0xff] }
   0x8   :  { %v120_v26 = vld [vmem:[%s292_s3 + $0x20] sm:$0x3] }
   0xa   :  { %95 = vmatpush.bf16.msra.mxu0 %v172_v2  ;;  %179 = vmatpush.bf16.msra.mxu1 %v172_v2 }
   0xb   :  { %180 = vmatpush.bf16.msra.mxu2 %v172_v2 }
   0xe   :  { %96 = vmatpush.bf16.msra.mxu0 %v171_v3  ;;  %181 = vmatpush.bf16.msra.mxu1 %v171_v3 }
   0xf   :  { %182 = vmatpush.bf16.msra.mxu2 %v171_v3 }
  0x12   :  { %97 = vmatpush.bf16.msra.mxu0 %v170_v4  ;;  %183 = vmatpush.bf16.msra.mxu1 %v170_v4 }
  0x13   :  { %184 = vmatpush.bf16.msra.mxu2 %v170_v4 }
  0x16   :  { %98 = vmatpush.bf16.msra.mxu0 %v169_v5  ;;  %185 = vmatpush.bf16.msra.mxu1 %v169_v5 }
  0x17   :  { %186 = vmatpush.bf16.msra.mxu2 %v169_v5 }
  0x1a   :  { %99 = vmatpush.bf16.msra.mxu0 %v168_v6  ;;  %187 = vmatpush.bf16.msra.mxu1 %v168_v6 }
  0x1b   :  { %188 = vmatpush.bf16.msra.mxu2 %v168_v6 }
  0x1e   :  { %100 = vmatpush.bf16.msra.mxu0 %v167_v7  ;;  %189 = vmatpush.bf16.msra.mxu1 %v167_v7 }
  0x1f   :  { %190 = vmatpush.bf16.msra.mxu2 %v167_v7 }
  0x21   :  { %101 = vmatmul.bf16.vlgmr.msra.gmra.mxu0 %v22_v13  ;;  %106 = vmatmul.bf16.vlgmr.msra.gmra.mxu1 %v23_v14 }
  0x22   :  { %111 = vmatmul.bf16.vlgmr.msra.gmra.mxu2 %v24_v15 }
  0x9e   :  { %v102_v17 = vpop.f32.mrf.mxu0  ;;  %v107_v19 = vpop.f32.mrf.mxu1 }
  0x9f   :  { %v103_v21 = vadd.f32 %v191_v16, %v102_v17  ;;  %v108_v22 = vadd.f32 %v191_v16, %v107_v19 }
  0xa1   :  { %v121_v23 = vadd.f32 %v116_v18, %v103_v21  ;;  %v123_v24 = vadd.f32 %v118_v20, %v108_v22 }
  0xa3   :  { %126 = vst [vmem:[%s293_s4] sm:$0xff] %v121_v23 }
  0xa4   :  { %128 = vst [vmem:[%s293_s4 + $0x10] sm:$0xff] %v123_v24 }
  0xa5   :  { %v112_v25 = vpop.f32.mrf.mxu2 }
  0xa6   :  { %v113_v27 = vadd.f32 %v191_v16, %v112_v25  ;;  %v104_v28 = vpop.f32.mrf.mxu0  ;;  %v109_v30 = vpop.f32.mrf.mxu1 }
  0xa7   :  { %v105_v32 = vadd.f32 %v191_v16, %v104_v28  ;;  %v110_v33 = vadd.f32 %v191_v16, %v109_v30 }
  0xa8   :  { %v125_v34 = vadd.f32 %v120_v26, %v113_v27 }
  0xa9   :  { %v122_v35 = vadd.f32 %v117_v29, %v105_v32  ;;  %v124_v36 = vadd.f32 %v119_v31, %v110_v33 }
  0xaa   :  { %130 = vst [vmem:[%s293_s4 + $0x20] sm:$0x3] %v125_v34 }
  0xab   :  { %127 = vst [vmem:[%s293_s4 + $0x8] sm:$0xff] %v122_v35 }
  0xac   :  { %129 = vst [vmem:[%s293_s4 + $0x18] sm:$0xff] %v124_v36 }
  0xad   :  { %v114_v37 = vpop.f32.mrf.mxu2 }

// kernel: vit_forward.24
= control target key start
LH: loop header
LB: loop body
LE: loop exit
PB: predicated region body
PF: predicated region fallthrough
CT: control target
= control target key end

     0   :  { %s795_s1 = inlined_call_operand.vmem [shape: bf16[512,128], index: 1, kind: input, shape index: {}]   ;;  %s796_s2 = inlined_call_operand.vmem [shape: f32[1,128], index: 2, kind: input, shape index: {}]   ;;  %s797_s0 = inlined_call_operand.vmem [shape: f32[34,512], index: 0, kind: input, shape index: {}]   ;;  %s798_s3 = inlined_call_operand.vmem [shape: f32[34,128], index: 3, kind: input, shape index: {}]   ;;  %s799_s4 = inlined_call_operand.vmem [shape: f32[34,128], index: 4, kind: output, shape index: {}]  }
   0x1   :  { %v555_v0 = vld [vmem:[%s795_s1 + $0x38] sm:$0xff]  ;;  %v554_v4 = vld [vmem:[%s795_s1 + $0x30] sm:$0xff]  ;;  %v553_v8 = vld [vmem:[%s795_s1 + $0x28] sm:$0xff] }
   0x2   :  { %v563_v1 = vld [vmem:[%s795_s1 + $0x78] sm:$0xff]  ;;  %309 = vmatpush.bf16.msra.mxu0 %v555_v0  ;;  %v562_v5 = vld [vmem:[%s795_s1 + $0x70] sm:$0xff]  ;;  %v561_v9 = vld [vmem:[%s795_s1 + $0x68] sm:$0xff] }
   0x3   :  { %v571_v2 = vld [vmem:[%s795_s1 + $0xb8] sm:$0xff]  ;;  %332 = vmatpush.bf16.msra.mxu1 %v563_v1  ;;  %v570_v6 = vld [vmem:[%s795_s1 + $0xb0] sm:$0xff]  ;;  %v569_v10 = vld [vmem:[%s795_s1 + $0xa8] sm:$0xff] }
   0x4   :  { %v579_v3 = vld [vmem:[%s795_s1 + $0xf8] sm:$0xff]  ;;  %355 = vmatpush.bf16.msra.mxu2 %v571_v2  ;;  %v578_v7 = vld [vmem:[%s795_s1 + $0xf0] sm:$0xff]  ;;  %v577_v11 = vld [vmem:[%s795_s1 + $0xe8] sm:$0xff] }
   0x5   :  { %378 = vmatpush.bf16.msra.mxu3 %v579_v3  ;;  %v552_v12 = vld [vmem:[%s795_s1 + $0x20] sm:$0xff]  ;;  %v551_v16 = vld [vmem:[%s795_s1 + $0x18] sm:$0xff]  ;;  %v550_v20 = vld [vmem:[%s795_s1 + $0x10] sm:$0xff] }
   0x6   :  { %310 = vmatpush.bf16.msra.mxu0 %v554_v4  ;;  %v560_v13 = vld [vmem:[%s795_s1 + $0x60] sm:$0xff]  ;;  %v559_v17 = vld [vmem:[%s795_s1 + $0x58] sm:$0xff]  ;;  %v558_v21 = vld [vmem:[%s795_s1 + $0x50] sm:$0xff] }
   0x7   :  { %333 = vmatpush.bf16.msra.mxu1 %v562_v5  ;;  %v568_v14 = vld [vmem:[%s795_s1 + $0xa0] sm:$0xff]  ;;  %v567_v18 = vld [vmem:[%s795_s1 + $0x98] sm:$0xff]  ;;  %v566_v22 = vld [vmem:[%s795_s1 + $0x90] sm:$0xff] }
   0x8   :  { %356 = vmatpush.bf16.msra.mxu2 %v570_v6  ;;  %v576_v15 = vld [vmem:[%s795_s1 + $0xe0] sm:$0xff]  ;;  %v575_v19 = vld [vmem:[%s795_s1 + $0xd8] sm:$0xff]  ;;  %v574_v23 = vld [vmem:[%s795_s1 + $0xd0] sm:$0xff] }
   0x9   :  { %379 = vmatpush.bf16.msra.mxu3 %v578_v7  ;;  %v549_v24 = vld [vmem:[%s795_s1 + $0x8] sm:$0xff]  ;;  %v548_v28 = vld [vmem:[%s795_s1] sm:$0xff]  ;;  %v19_v36 = vld [vmem:[%s797_s0 + $0x10] sm:$0xff] }
   0xa   :  { %311 = vmatpush.bf16.msra.mxu0 %v553_v8  ;;  %v557_v25 = vld [vmem:[%s795_s1 + $0x48] sm:$0xff]  ;;  %v556_v29 = vld [vmem:[%s795_s1 + $0x40] sm:$0xff]  ;;  %v23_v37 = vld [vmem:[%s797_s0 + $0x30] sm:$0xff] }
   0xb   :  { %334 = vmatpush.bf16.msra.mxu1 %v561_v9  ;;  %v565_v26 = vld [vmem:[%s795_s1 + $0x88] sm:$0xff]  ;;  %v564_v30 = vld [vmem:[%s795_s1 + $0x80] sm:$0xff]  ;;  %v20_v38 = vld [vmem:[%s797_s0 + $0x18] sm:$0xff]  ;;  %v39_v42 = vpack.c.bf16 %v23_v37, %v19_v36 }
   0xc   :  { %357 = vmatpush.bf16.msra.mxu2 %v569_v10  ;;  %v573_v27 = vld [vmem:[%s795_s1 + $0xc8] sm:$0xff]  ;;  %v572_v31 = vld [vmem:[%s795_s1 + $0xc0] sm:$0xff]  ;;  %v24_v39 = vld [vmem:[%s797_s0 + $0x38] sm:$0xff] }
   0xd   :  { %380 = vmatpush.bf16.msra.mxu3 %v577_v11  ;;  %v17_v32 = vld [vmem:[%s797_s0] sm:$0xff]  ;;  %v18_v34 = vld [vmem:[%s797_s0 + $0x8] sm:$0xff]  ;;  %v40_v43 = vpack.c.bf16 %v24_v39, %v20_v38  ;;  %v27_v48 = vld [vmem:[%s797_s0 + $0x50] sm:$0xff] }
   0xe   :  { %312 = vmatpush.bf16.msra.mxu0 %v552_v12  ;;  %v21_v33 = vld [vmem:[%s797_s0 + $0x20] sm:$0xff]  ;;  %v22_v35 = vld [vmem:[%s797_s0 + $0x28] sm:$0xff]  ;;  %v31_v49 = vld [vmem:[%s797_s0 + $0x70] sm:$0xff] }
   0xf   :  { %335 = vmatpush.bf16.msra.mxu1 %v560_v13  ;;  %v37_v40 = vpack.c.bf16 %v21_v33, %v17_v32  ;;  %v38_v41 = vpack.c.bf16 %v22_v35, %v18_v34  ;;  %v25_v44 = vld [vmem:[%s797_s0 + $0x40] sm:$0xff]  ;;  %v26_v46 = vld [vmem:[%s797_s0 + $0x48] sm:$0xff]  ;;  %v28_v50 = vld [vmem:[%s797_s0 + $0x58] sm:$0xff]  ;;  %v43_v54 = vpack.c.bf16 %v31_v49, %v27_v48 }
  0x10   :  { %358 = vmatpush.bf16.msra.mxu2 %v568_v14  ;;  %v29_v45 = vld [vmem:[%s797_s0 + $0x60] sm:$0xff]  ;;  %v30_v47 = vld [vmem:[%s797_s0 + $0x68] sm:$0xff]  ;;  %v32_v51 = vld [vmem:[%s797_s0 + $0x78] sm:$0xff] }
  0x11   :  { %381 = vmatpush.bf16.msra.mxu3 %v576_v15  ;;  %v41_v52 = vpack.c.bf16 %v29_v45, %v25_v44  ;;  %v42_v53 = vpack.c.bf16 %v30_v47, %v26_v46  ;;  %v44_v55 = vpack.c.bf16 %v32_v51, %v28_v50  ;;  %v33_v56 = vld [vmem:[%s797_s0 + $0x80] sm:$0x3]  ;;  %v34_v57 = vld [vmem:[%s797_s0 + $0x88] sm:$0x3]  ;;  %v35_v58 = vld [vmem:[%s797_s0 + $0x90] sm:$0x3] }
  0x12   :  { %313 = vmatpush.bf16.msra.mxu0 %v551_v16  ;;  %v36_v59 = vld [vmem:[%s797_s0 + $0x98] sm:$0x3]  ;;  %v45_v60 = vpack.c.bf16 %v33_v56, %v33_v56  ;;  %v46_v61 = vpack.c.bf16 %v34_v57, %v34_v57  ;;  %v47_v62 = vpack.c.bf16 %v35_v58, %v35_v58  ;;  %v580_v0 = vld [vmem:[%s796_s2] ss:$0 sm:$0xff] }
  0x13   :  { %336 = vmatpush.bf16.msra.mxu1 %v559_v17  ;;  %v48_v63 = vpack.c.bf16 %v36_v59, %v36_v59  ;;  %v401_v10 = vld [vmem:[%s798_s3] sm:$0xff] }
  0x14   :  { %359 = vmatpush.bf16.msra.mxu2 %v567_v18  ;;  %v405_v50 = vld [vmem:[%s798_s3 + $0x20] sm:$0x3] }
  0x15   :  { %382 = vmatpush.bf16.msra.mxu3 %v575_v19 }
  0x16   :  { %314 = vmatpush.bf16.msra.mxu0 %v550_v20  ;;  %v402_v20 = vld [vmem:[%s798_s3 + $0x8] sm:$0xff] }
  0x17   :  { %337 = vmatpush.bf16.msra.mxu1 %v558_v21 }
  0x18   :  { %360 = vmatpush.bf16.msra.mxu2 %v566_v22 }
  0x19   :  { %383 = vmatpush.bf16.msra.mxu3 %v574_v23 }
  0x1a   :  { %315 = vmatpush.bf16.msra.mxu0 %v549_v24 }
  0x1b   :  { %338 = vmatpush.bf16.msra.mxu1 %v557_v25 }
  0x1c   :  { %361 = vmatpush.bf16.msra.mxu2 %v565_v26 }
  0x1d   :  { %384 = vmatpush.bf16.msra.mxu3 %v573_v27 }
  0x1e   :  { %316 = vmatpush.bf16.msra.mxu0 %v548_v28 }
  0x1f   :  { %339 = vmatpush.bf16.msra.mxu1 %v556_v29 }
  0x20   :  { %362 = vmatpush.bf16.msra.mxu2 %v564_v30  ;;  %v403_v30 = vld [vmem:[%s798_s3 + $0x10] sm:$0xff] }
  0x21   :  { %385 = vmatpush.bf16.msra.mxu3 %v572_v31  ;;  %317 = vmatmul.bf16.vlgmr.msra.gmra.mxu0 %v37_v40  ;;  %v404_v40 = vld [vmem:[%s798_s3 + $0x18] sm:$0xff] }
  0x22   :  { %340 = vmatmul.bf16.vlgmr.msra.gmra.mxu1 %v38_v41 }
  0x23   :  { %363 = vmatmul.bf16.vlgmr.msra.gmra.mxu2 %v39_v42 }
  0x24   :  { %386 = vmatmul.bf16.vlgmr.msra.gmra.mxu3 %v40_v43 }
  0x31   :  { %322 = vmatmul.bf16.gmra.mxu0 %v41_v52 }
  0x32   :  { %345 = vmatmul.bf16.gmra.mxu1 %v42_v53 }
  0x33   :  { %368 = vmatmul.bf16.gmra.mxu2 %v43_v54 }
  0x34   :  { %391 = vmatmul.bf16.gmra.mxu3 %v44_v55 }
  0x41   :  { %327 = vmatmul.bf16.gmra.mxu0 %v45_v60 }
  0x42   :  { %350 = vmatmul.bf16.gmra.mxu1 %v46_v61 }
  0x43   :  { %373 = vmatmul.bf16.gmra.mxu2 %v47_v62 }
  0x44   :  { %396 = vmatmul.bf16.gmra.mxu3 %v48_v63 }
  0x9e   :  { %v318_v1 = vpop.f32.mrf.mxu0 }
  0x9f   :  { %v341_v2 = vpop.f32.mrf.mxu1  ;;  %v319_v3 = vadd.f32 %v580_v0, %v318_v1 }
  0xa1   :  { %v342_v4 = vadd.f32 %v341_v2, %v319_v3 }
  0xa6   :  { %v364_v5 = vpop.f32.mrf.mxu2  ;;  %v320_v8 = vpop.f32.mrf.mxu0 }
  0xa7   :  { %v387_v6 = vpop.f32.mrf.mxu3  ;;  %v365_v7 = vadd.f32 %v364_v5, %v342_v4  ;;  %v343_v9 = vpop.f32.mrf.mxu1  ;;  %v321_v12 = vadd.f32 %v580_v0, %v320_v8 }
  0xa9   :  { %v388_v11 = vadd.f32 %v387_v6, %v365_v7  ;;  %v344_v14 = vadd.f32 %v343_v9, %v321_v12 }
  0xab   :  { %v406_v13 = vadd.f32 %v401_v10, %v388_v11 }
  0xad   :  { %411 = vst [vmem:[%s799_s4] sm:$0xff] %v406_v13 }
  0xae   :  { %v366_v15 = vpop.f32.mrf.mxu2  ;;  %v323_v18 = vpop.f32.mrf.mxu0 }
  0xaf   :  { %v389_v16 = vpop.f32.mrf.mxu3  ;;  %v367_v17 = vadd.f32 %v366_v15, %v344_v14  ;;  %v346_v19 = vpop.f32.mrf.mxu1  ;;  %v324_v21 = vadd.f32 %v580_v0, %v323_v18 }
  0xb1   :  { %v390_v22 = vadd.f32 %v389_v16, %v367_v17  ;;  %v347_v24 = vadd.f32 %v346_v19, %v324_v21 }
  0xb3   :  { %v407_v23 = vadd.f32 %v402_v20, %v390_v22 }
  0xb5   :  { %412 = vst [vmem:[%s799_s4 + $0x8] sm:$0xff] %v407_v23 }
  0xb6   :  { %v369_v25 = vpop.f32.mrf.mxu2  ;;  %v325_v28 = vpop.f32.mrf.mxu0 }
  0xb7   :  { %v392_v26 = vpop.f32.mrf.mxu3  ;;  %v370_v27 = vadd.f32 %v369_v25, %v347_v24  ;;  %v348_v29 = vpop.f32.mrf.mxu1  ;;  %v326_v32 = vadd.f32 %v580_v0, %v325_v28 }
  0xb9   :  { %v393_v31 = vadd.f32 %v392_v26, %v370_v27  ;;  %v349_v34 = vadd.f32 %v348_v29, %v326_v32 }
  0xbb   :  { %v408_v33 = vadd.f32 %v403_v30, %v393_v31 }
  0xbd   :  { %413 = vst [vmem:[%s799_s4 + $0x10] sm:$0xff] %v408_v33 }
  0xbe   :  { %v371_v35 = vpop.f32.mrf.mxu2  ;;  %v328_v38 = vpop.f32.mrf.mxu0 }
  0xbf   :  { %v394_v36 = vpop.f32.mrf.mxu3  ;;  %v372_v37 = vadd.f32 %v371_v35, %v349_v34  ;;  %v351_v39 = vpop.f32.mrf.mxu1  ;;  %v329_v41 = vadd.f32 %v580_v0, %v328_v38 }
  0xc1   :  { %v395_v42 = vadd.f32 %v394_v36, %v372_v37  ;;  %v352_v44 = vadd.f32 %v351_v39, %v329_v41 }
  0xc3   :  { %v409_v43 = vadd.f32 %v404_v40, %v395_v42 }
  0xc5   :  { %414 = vst [vmem:[%s799_s4 + $0x18] sm:$0xff] %v409_v43 }
  0xc6   :  { %v374_v45 = vpop.f32.mrf.mxu2  ;;  %v330_v48 = vpop.f32.mrf.mxu0 }
  0xc7   :  { %v397_v46 = vpop.f32.mrf.mxu3  ;;  %v375_v47 = vadd.f32 %v374_v45, %v352_v44  ;;  %v353_v49 = vpop.f32.mrf.mxu1 }
  0xc9   :  { %v398_v51 = vadd.f32 %v397_v46, %v375_v47 }
  0xcb   :  { %v410_v52 = vadd.f32 %v405_v50, %v398_v51 }
  0xcd   :  { %415 = vst [vmem:[%s799_s4 + $0x20] sm:$0x3] %v410_v52 }
  0xce   :  { %v376_v53 = vpop.f32.mrf.mxu2 }
  0xcf   :  { %v399_v54 = vpop.f32.mrf.mxu3 }

// kernel: vit_forward.23
= control target key start
LH: loop header
LB: loop body
LE: loop exit
PB: predicated region body
PF: predicated region fallthrough
CT: control target
= control target key end

     0   :  { %s1178_s1 = inlined_call_operand.vmem [shape: bf16[128,512], index: 1, kind: input, shape index: {}]   ;;  %s1179_s0 = inlined_call_operand.vmem [shape: f32[34,128], index: 0, kind: input, shape index: {}]   ;;  %s1180_s2 = inlined_call_operand.vmem [shape: f32[1,512], index: 2, kind: input, shape index: {}]   ;;  %s1181_s3 = inlined_call_operand.vmem [shape: f32[34,512], index: 3, kind: output, shape index: {}]  }
   0x1   :  { %v634_v0 = vld [vmem:[%s1178_s1 + $0xe0] sm:$0xf]  ;;  %v678_v1 = vld [vmem:[%s1178_s1 + $0xec] sm:$0xf0]  ;;  %v676_v2 = vld [vmem:[%s1178_s1 + $0xe4] sm:$0xf] }
   0x2   :  { %v635_v3 = vor.u32 %v678_v1, %v634_v0  ;;  %v636_v4 = vld [vmem:[%s1178_s1 + $0xf0] sm:$0xf0]  ;;  %v642_v5 = vld [vmem:[%s1178_s1 + $0xe8] sm:$0xf]  ;;  %v679_v6 = vld [vmem:[%s1178_s1 + $0xf4] sm:$0xf0] }
   0x3   :  { %v639_v7 = vor.u32 %v676_v2, %v636_v4  ;;  %v643_v8 = vor.u32 %v679_v6, %v642_v5  ;;  %v677_v9 = vld [vmem:[%s1178_s1 + $0xec] sm:$0xf]  ;;  %v644_v10 = vld [vmem:[%s1178_s1 + $0xf8] sm:$0xf0]  ;;  %v618_v11 = vld [vmem:[%s1178_s1 + $0xc0] sm:$0xf] }
   0x4   :  { %224 = vmatpush.bf16.msra.mxu0 %v635_v3  ;;  %v647_v12 = vor.u32 %v677_v9, %v644_v10  ;;  %v674_v13 = vld [vmem:[%s1178_s1 + $0xcc] sm:$0xf0]  ;;  %v672_v14 = vld [vmem:[%s1178_s1 + $0xc4] sm:$0xf]  ;;  %v620_v15 = vld [vmem:[%s1178_s1 + $0xd0] sm:$0xf0] }
   0x5   :  { %247 = vmatpush.bf16.msra.mxu1 %v639_v7  ;;  %270 = vmatpush.bf16.msra.mxu2 %v643_v8  ;;  %v619_v16 = vor.u32 %v674_v13, %v618_v11  ;;  %v623_v17 = vor.u32 %v672_v14, %v620_v15  ;;  %v626_v18 = vld [vmem:[%s1178_s1 + $0xc8] sm:$0xf]  ;;  %v675_v19 = vld [vmem:[%s1178_s1 + $0xd4] sm:$0xf0]  ;;  %v673_v20 = vld [vmem:[%s1178_s1 + $0xcc] sm:$0xf] }
   0x6   :  { %293 = vmatpush.bf16.msra.mxu3 %v647_v12  ;;  %v627_v21 = vor.u32 %v675_v19, %v626_v18  ;;  %v628_v22 = vld [vmem:[%s1178_s1 + $0xd8] sm:$0xf0]  ;;  %v602_v23 = vld [vmem:[%s1178_s1 + $0xa0] sm:$0xf]  ;;  %v670_v24 = vld [vmem:[%s1178_s1 + $0xac] sm:$0xf0] }
   0x7   :  { %v631_v25 = vor.u32 %v673_v20, %v628_v22  ;;  %v668_v26 = vld [vmem:[%s1178_s1 + $0xa4] sm:$0xf]  ;;  %v604_v27 = vld [vmem:[%s1178_s1 + $0xb0] sm:$0xf0]  ;;  %v610_v28 = vld [vmem:[%s1178_s1 + $0xa8] sm:$0xf]  ;;  %v603_v29 = vor.u32 %v670_v24, %v602_v23 }
   0x8   :  { %225 = vmatpush.bf16.msra.mxu0 %v619_v16  ;;  %v671_v30 = vld [vmem:[%s1178_s1 + $0xb4] sm:$0xf0]  ;;  %v669_v31 = vld [vmem:[%s1178_s1 + $0xac] sm:$0xf]  ;;  %v612_v32 = vld [vmem:[%s1178_s1 + $0xb8] sm:$0xf0]  ;;  %v607_v33 = vor.u32 %v668_v26, %v604_v27 }
   0x9   :  { %248 = vmatpush.bf16.msra.mxu1 %v623_v17  ;;  %271 = vmatpush.bf16.msra.mxu2 %v627_v21  ;;  %v611_v34 = vor.u32 %v671_v30, %v610_v28  ;;  %v586_v35 = vld [vmem:[%s1178_s1 + $0x80] sm:$0xf]  ;;  %v666_v36 = vld [vmem:[%s1178_s1 + $0x8c] sm:$0xf0]  ;;  %v664_v37 = vld [vmem:[%s1178_s1 + $0x84] sm:$0xf]  ;;  %v615_v38 = vor.u32 %v669_v31, %v612_v32 }
   0xa   :  { %294 = vmatpush.bf16.msra.mxu3 %v631_v25  ;;  %v588_v39 = vld [vmem:[%s1178_s1 + $0x90] sm:$0xf0]  ;;  %v594_v40 = vld [vmem:[%s1178_s1 + $0x88] sm:$0xf]  ;;  %v667_v41 = vld [vmem:[%s1178_s1 + $0x94] sm:$0xf0]  ;;  %v587_v44 = vor.u32 %v666_v36, %v586_v35 }
   0xb   :  { %v665_v42 = vld [vmem:[%s1178_s1 + $0x8c] sm:$0xf]  ;;  %v596_v43 = vld [vmem:[%s1178_s1 + $0x98] sm:$0xf0]  ;;  %v591_v45 = vor.u32 %v664_v37, %v588_v39  ;;  %v595_v46 = vor.u32 %v667_v41, %v594_v40  ;;  %v570_v47 = vld [vmem:[%s1178_s1 + $0x60] sm:$0xf] }
   0xc   :  { %226 = vmatpush.bf16.msra.mxu0 %v603_v29  ;;  %v662_v48 = vld [vmem:[%s1178_s1 + $0x6c] sm:$0xf0]  ;;  %v660_v49 = vld [vmem:[%s1178_s1 + $0x64] sm:$0xf]  ;;  %v599_v50 = vor.u32 %v665_v42, %v596_v43  ;;  %v572_v51 = vld [vmem:[%s1178_s1 + $0x70] sm:$0xf0] }
   0xd   :  { %249 = vmatpush.bf16.msra.mxu1 %v607_v33  ;;  %272 = vmatpush.bf16.msra.mxu2 %v611_v34  ;;  %v578_v52 = vld [vmem:[%s1178_s1 + $0x68] sm:$0xf]  ;;  %v663_v53 = vld [vmem:[%s1178_s1 + $0x74] sm:$0xf0]  ;;  %v661_v54 = vld [vmem:[%s1178_s1 + $0x6c] sm:$0xf]  ;;  %v571_v56 = vor.u32 %v662_v48, %v570_v47  ;;  %v575_v57 = vor.u32 %v660_v49, %v572_v51 }
   0xe   :  { %295 = vmatpush.bf16.msra.mxu3 %v615_v38  ;;  %v580_v55 = vld [vmem:[%s1178_s1 + $0x78] sm:$0xf0]  ;;  %v579_v58 = vor.u32 %v663_v53, %v578_v52  ;;  %v554_v59 = vld [vmem:[%s1178_s1 + $0x40] sm:$0xf]  ;;  %v658_v60 = vld [vmem:[%s1178_s1 + $0x4c] sm:$0xf0] }
   0xf   :  { %v656_v61 = vld [vmem:[%s1178_s1 + $0x44] sm:$0xf]  ;;  %v583_v62 = vor.u32 %v661_v54, %v580_v55  ;;  %v556_v63 = vld [vmem:[%s1178_s1 + $0x50] sm:$0xf0]  ;;  %v562_v0 = vld [vmem:[%s1178_s1 + $0x48] sm:$0xf]  ;;  %v555_v4 = vor.u32 %v658_v60, %v554_v59 }
  0x10   :  { %227 = vmatpush.bf16.msra.mxu0 %v587_v44  ;;  %v659_v1 = vld [vmem:[%s1178_s1 + $0x54] sm:$0xf0]  ;;  %v657_v2 = vld [vmem:[%s1178_s1 + $0x4c] sm:$0xf]  ;;  %v564_v3 = vld [vmem:[%s1178_s1 + $0x58] sm:$0xf0]  ;;  %v559_v5 = vor.u32 %v656_v61, %v556_v63 }
  0x11   :  { %250 = vmatpush.bf16.msra.mxu1 %v591_v45  ;;  %273 = vmatpush.bf16.msra.mxu2 %v595_v46  ;;  %v563_v6 = vor.u32 %v659_v1, %v562_v0  ;;  %v538_v7 = vld [vmem:[%s1178_s1 + $0x20] sm:$0xf]  ;;  %v654_v8 = vld [vmem:[%s1178_s1 + $0x2c] sm:$0xf0]  ;;  %v652_v9 = vld [vmem:[%s1178_s1 + $0x24] sm:$0xf]  ;;  %v567_v10 = vor.u32 %v657_v2, %v564_v3 }
  0x12   :  { %296 = vmatpush.bf16.msra.mxu3 %v599_v50  ;;  %v540_v11 = vld [vmem:[%s1178_s1 + $0x30] sm:$0xf0]  ;;  %v546_v12 = vld [vmem:[%s1178_s1 + $0x28] sm:$0xf]  ;;  %v655_v13 = vld [vmem:[%s1178_s1 + $0x34] sm:$0xf0]  ;;  %v539_v16 = vor.u32 %v654_v8, %v538_v7 }
  0x13   :  { %v653_v14 = vld [vmem:[%s1178_s1 + $0x2c] sm:$0xf]  ;;  %v548_v15 = vld [vmem:[%s1178_s1 + $0x38] sm:$0xf0]  ;;  %v543_v17 = vor.u32 %v652_v9, %v540_v11  ;;  %v547_v18 = vor.u32 %v655_v13, %v546_v12  ;;  %v522_v19 = vld [vmem:[%s1178_s1] sm:$0xf] }
  0x14   :  { %228 = vmatpush.bf16.msra.mxu0 %v571_v56  ;;  %v650_v20 = vld [vmem:[%s1178_s1 + $0xc] sm:$0xf0]  ;;  %v648_v21 = vld [vmem:[%s1178_s1 + $0x4] sm:$0xf]  ;;  %v551_v22 = vor.u32 %v653_v14, %v548_v15  ;;  %v524_v23 = vld [vmem:[%s1178_s1 + $0x10] sm:$0xf0] }
  0x15   :  { %251 = vmatpush.bf16.msra.mxu1 %v575_v57  ;;  %274 = vmatpush.bf16.msra.mxu2 %v579_v58  ;;  %v530_v24 = vld [vmem:[%s1178_s1 + $0x8] sm:$0xf]  ;;  %v651_v25 = vld [vmem:[%s1178_s1 + $0x14] sm:$0xf0]  ;;  %v649_v26 = vld [vmem:[%s1178_s1 + $0xc] sm:$0xf]  ;;  %v523_v28 = vor.u32 %v650_v20, %v522_v19  ;;  %v527_v31 = vor.u32 %v648_v21, %v524_v23 }
  0x16   :  { %297 = vmatpush.bf16.msra.mxu3 %v583_v62  ;;  %v532_v27 = vld [vmem:[%s1178_s1 + $0x18] sm:$0xf0]  ;;  %v14_v29 = vld [vmem:[%s1179_s0] sm:$0xff]  ;;  %v15_v30 = vld [vmem:[%s1179_s0 + $0x8] sm:$0xff]  ;;  %v531_v32 = vor.u32 %v651_v25, %v530_v24 }
  0x17   :  { %v535_v33 = vor.u32 %v649_v26, %v532_v27  ;;  %v19_v34 = vpack.c.bf16 %v15_v30, %v14_v29  ;;  %v16_v35 = vld [vmem:[%s1179_s0 + $0x10] sm:$0xff]  ;;  %v17_v36 = vld [vmem:[%s1179_s0 + $0x18] sm:$0xff]  ;;  %v18_v38 = vld [vmem:[%s1179_s0 + $0x20] sm:$0x3] }
  0x18   :  { %229 = vmatpush.bf16.msra.mxu0 %v555_v4  ;;  %v20_v37 = vpack.c.bf16 %v17_v36, %v16_v35  ;;  %v21_v39 = vpack.c.bf16 %v18_v38, %v18_v38  ;;  %v54_v40 = vld [vmem:[%s1180_s2] sm:$0xf] }
  0x19   :  { %252 = vmatpush.bf16.msra.mxu1 %v559_v5  ;;  %275 = vmatpush.bf16.msra.mxu2 %v563_v6  ;;  %v950_v41 = vperm.slane %v54_v40, 0  ;;  %v952_v42 = vperm.slane %v54_v40, 1  ;;  %v964_v49 = vperm.slane %v54_v40, 2  ;;  %v967_v51 = vperm.slane %v54_v40, 3 }
  0x1a   :  { %298 = vmatpush.bf16.msra.mxu3 %v567_v10 }
  0x1c   :  { %230 = vmatpush.bf16.msra.mxu0 %v539_v16 }
  0x1d   :  { %253 = vmatpush.bf16.msra.mxu1 %v543_v17  ;;  %276 = vmatpush.bf16.msra.mxu2 %v547_v18 }
  0x1e   :  { %299 = vmatpush.bf16.msra.mxu3 %v551_v22 }
  0x20   :  { %231 = vmatpush.bf16.msra.mxu0 %v523_v28 }
  0x21   :  { %254 = vmatpush.bf16.msra.mxu1 %v527_v31  ;;  %277 = vmatpush.bf16.msra.mxu2 %v531_v32 }
  0x22   :  { %300 = vmatpush.bf16.msra.mxu3 %v535_v33 }
  0x23   :  { %232 = vmatmul.bf16.vlgmr.msra.gmra.mxu0 %v19_v34 }
  0x24   :  { %255 = vmatmul.bf16.vlgmr.msra.gmra.mxu1 %v19_v34  ;;  %278 = vmatmul.bf16.vlgmr.msra.gmra.mxu2 %v19_v34 }
  0x25   :  { %301 = vmatmul.bf16.vlgmr.msra.gmra.mxu3 %v19_v34 }
  0x33   :  { %237 = vmatmul.bf16.gmra.mxu0 %v20_v37 }
  0x34   :  { %260 = vmatmul.bf16.gmra.mxu1 %v20_v37  ;;  %283 = vmatmul.bf16.gmra.mxu2 %v20_v37 }
  0x35   :  { %306 = vmatmul.bf16.gmra.mxu3 %v20_v37 }
  0x43   :  { %242 = vmatmul.bf16.gmra.mxu0 %v21_v39 }
  0x44   :  { %265 = vmatmul.bf16.gmra.mxu1 %v21_v39  ;;  %288 = vmatmul.bf16.gmra.mxu2 %v21_v39 }
  0x45   :  { %311 = vmatmul.bf16.gmra.mxu3 %v21_v39 }
  0xa0   :  { %v233_v43 = vpop.f32.mrf.mxu0 }
  0xa1   :  { %v955_v44 = vadd.f32 %v233_v43, %v950_v41  ;;  %v256_v45 = vpop.f32.mrf.mxu1 }
  0xa2   :  { %v958_v46 = vadd.f32 %v256_v45, %v952_v42 }
  0xa3   :  { %v316_v47 = vmul.f32 %v955_v44, %v955_v44 }
  0xa4   :  { %v317_v48 = vmul.f32 %v958_v46, %v958_v46 }
  0xa5   :  { %v336_v50 = vmul.f32 %v316_v47, %v955_v44 }
  0xa6   :  { %v337_v52 = vmul.f32 %v317_v48, %v958_v46 }
  0xa7   :  { %v356_v53 = vmul.f32 0.044715, %v336_v50  ;;  %v279_v54 = vpop.f32.mrf.mxu2 }
  0xa8   :  { %v357_v55 = vmul.f32 0.044715, %v337_v52  ;;  %v971_v56 = vadd.f32 %v279_v54, %v964_v49  ;;  %v302_v57 = vpop.f32.mrf.mxu3  ;;  %v235_v58 = vpop.f32.mrf.mxu0 }
  0xa9   :  { %v376_v59 = vadd.f32 %v356_v53, %v955_v44  ;;  %v975_v60 = vadd.f32 %v302_v57, %v967_v51  ;;  %v978_v61 = vadd.f32 %v235_v58, %v950_v41  ;;  %v258_v62 = vpop.f32.mrf.mxu1 }
  0xaa   :  { %v377_v63 = vadd.f32 %v357_v55, %v958_v46  ;;  %v318_v0 = vmul.f32 %v971_v56, %v971_v56  ;;  %v984_v1 = vadd.f32 %v258_v62, %v952_v42 }
  0xab   :  { %v396_v2 = vmul.f32 0.7978846, %v376_v59  ;;  %v319_v3 = vmul.f32 %v975_v60, %v975_v60  ;;  %v320_v4 = vmul.f32 %v978_v61, %v978_v61 }
  0xac   :  { %v397_v5 = vmul.f32 0.7978846, %v377_v63  ;;  %v338_v6 = vmul.f32 %v318_v0, %v971_v56  ;;  %v321_v7 = vmul.f32 %v984_v1, %v984_v1 }
  0xad   :  { %680 = vtanh.f32 %v396_v2  ;;  %v339_v8 = vmul.f32 %v319_v3, %v975_v60  ;;  %v340_v9 = vmul.f32 %v320_v4, %v978_v61 }
  0xae   :  { %682 = vtanh.f32 %v397_v5  ;;  %v358_v10 = vmul.f32 0.044715, %v338_v6  ;;  %v341_v11 = vmul.f32 %v321_v7, %v984_v1 }
  0xaf   :  { %v359_v12 = vmul.f32 0.044715, %v339_v8  ;;  %v360_v13 = vmul.f32 0.044715, %v340_v9  ;;  %v281_v14 = vpop.f32.mrf.mxu2 }
  0xb0   :  { %v378_v15 = vadd.f32 %v358_v10, %v971_v56  ;;  %v361_v16 = vmul.f32 0.044715, %v341_v11  ;;  %v998_v17 = vadd.f32 %v281_v14, %v964_v49  ;;  %v304_v18 = vpop.f32.mrf.mxu3  ;;  %v238_v19 = vpop.f32.mrf.mxu0 }
  0xb1   :  { %v379_v20 = vadd.f32 %v359_v12, %v975_v60  ;;  %v380_v21 = vadd.f32 %v360_v13, %v978_v61  ;;  %v1003_v22 = vadd.f32 %v304_v18, %v967_v51  ;;  %v1006_v23 = vadd.f32 %v238_v19, %v950_v41  ;;  %v261_v24 = vpop.f32.mrf.mxu1 }
  0xb2   :  { %v398_v25 = vmul.f32 0.7978846, %v378_v15  ;;  %v381_v26 = vadd.f32 %v361_v16, %v984_v1  ;;  %v322_v27 = vmul.f32 %v998_v17, %v998_v17  ;;  %v1012_v28 = vadd.f32 %v261_v24, %v952_v42 }
  0xb3   :  { %v681_v29 = vpop.eup %680  ;;  %v399_v30 = vmul.f32 0.7978846, %v379_v20  ;;  %v400_v31 = vmul.f32 0.7978846, %v380_v21  ;;  %v323_v32 = vmul.f32 %v1003_v22, %v1003_v22  ;;  %v324_v33 = vmul.f32 %v1006_v23, %v1006_v23 }
  0xb4   :  { %v683_v34 = vpop.eup %682  ;;  %v436_v35 = vadd.f32 1.0, %v681_v29  ;;  %684 = vtanh.f32 %v398_v25  ;;  %v401_v36 = vmul.f32 0.7978846, %v381_v26  ;;  %v342_v37 = vmul.f32 %v322_v27, %v998_v17 }
  0xb5   :  { %v437_v38 = vadd.f32 1.0, %v683_v34  ;;  %686 = vtanh.f32 %v399_v30  ;;  %v343_v39 = vmul.f32 %v323_v32, %v1003_v22  ;;  %v344_v40 = vmul.f32 %v324_v33, %v1006_v23 }
  0xb6   :  { %v456_v43 = vmul.f32 0.5, %v436_v35  ;;  %688 = vtanh.f32 %v400_v31  ;;  %v362_v45 = vmul.f32 0.044715, %v342_v37  ;;  %v325_v47 = vmul.f32 %v1012_v28, %v1012_v28 }
  0xb7   :  { %v457_v48 = vmul.f32 0.5, %v437_v38  ;;  %690 = vtanh.f32 %v401_v36  ;;  %v363_v50 = vmul.f32 0.044715, %v343_v39  ;;  %v364_v52 = vmul.f32 0.044715, %v344_v40  ;;  %v284_v53 = vpop.f32.mrf.mxu2 }
  0xb8   :  { %v476_v54 = vmul.f32 %v456_v43, %v955_v44  ;;  %v382_v55 = vadd.f32 %v362_v45, %v998_v17  ;;  %v345_v57 = vmul.f32 %v325_v47, %v1012_v28  ;;  %v1027_v58 = vadd.f32 %v284_v53, %v964_v49  ;;  %v307_v59 = vpop.f32.mrf.mxu3  ;;  %v240_v62 = vpop.f32.mrf.mxu0 }
  0xb9   :  { %v477_v63 = vmul.f32 %v457_v48, %v958_v46  ;;  %v383_v0 = vadd.f32 %v363_v50, %v1003_v22  ;;  %v384_v2 = vadd.f32 %v364_v52, %v1006_v23  ;;  %v1033_v3 = vadd.f32 %v307_v59, %v967_v51  ;;  %v263_v4 = vpop.f32.mrf.mxu1 }
  0xba   :  { %v685_v44 = vpop.eup %684  ;;  %496 = vst [vmem:[%s1181_s3] sm:$0xff] %v476_v54  ;;  %v402_v5 = vmul.f32 0.7978846, %v382_v55  ;;  %v365_v6 = vmul.f32 0.044715, %v345_v57  ;;  %v326_v7 = vmul.f32 %v1027_v58, %v1027_v58  ;;  %v1041_v46 = vadd.f32 %v240_v62, %v950_v41 }
  0xbb   :  { %v687_v8 = vpop.eup %686  ;;  %497 = vst [vmem:[%s1181_s3 + $0x8] sm:$0xff] %v477_v63  ;;  %v438_v9 = vadd.f32 1.0, %v685_v44  ;;  %v403_v10 = vmul.f32 0.7978846, %v383_v0  ;;  %v404_v11 = vmul.f32 0.7978846, %v384_v2  ;;  %v327_v12 = vmul.f32 %v1033_v3, %v1033_v3 }
  0xbc   :  { %v689_v13 = vpop.eup %688  ;;  %v439_v14 = vadd.f32 1.0, %v687_v8  ;;  %692 = vtanh.f32 %v402_v5  ;;  %v385_v15 = vadd.f32 %v365_v6, %v1012_v28  ;;  %v346_v16 = vmul.f32 %v326_v7, %v1027_v58 }
  0xbd   :  { %v691_v18 = vpop.eup %690  ;;  %v458_v19 = vmul.f32 0.5, %v438_v9  ;;  %v440_v20 = vadd.f32 1.0, %v689_v13  ;;  %694 = vtanh.f32 %v403_v10  ;;  %v347_v21 = vmul.f32 %v327_v12, %v1033_v3 }
  0xbe   :  { %v459_v24 = vmul.f32 0.5, %v439_v14  ;;  %v441_v25 = vadd.f32 1.0, %v691_v18  ;;  %696 = vtanh.f32 %v404_v11  ;;  %v405_v26 = vmul.f32 0.7978846, %v385_v15 }
  0xbf   :  { %v478_v27 = vmul.f32 %v458_v19, %v971_v56  ;;  %v460_v29 = vmul.f32 0.5, %v440_v20  ;;  %v366_v30 = vmul.f32 0.044715, %v346_v16  ;;  %v367_v31 = vmul.f32 0.044715, %v347_v21  ;;  %v286_v32 = vpop.f32.mrf.mxu2 }
  0xc0   :  { %v479_v33 = vmul.f32 %v459_v24, %v975_v60  ;;  %v461_v34 = vmul.f32 0.5, %v441_v25  ;;  %698 = vtanh.f32 %v405_v26  ;;  %v328_v35 = vmul.f32 %v1041_v46, %v1041_v46  ;;  %v309_v36 = vpop.f32.mrf.mxu3  ;;  %v243_v37 = vpop.f32.mrf.mxu0 }
  0xc1   :  { %498 = vst [vmem:[%s1181_s3 + $0x10] sm:$0xff] %v478_v27  ;;  %v480_v38 = vmul.f32 %v460_v29, %v978_v61  ;;  %v386_v56 = vadd.f32 %v366_v30, %v1027_v58  ;;  %v387_v39 = vadd.f32 %v367_v31, %v1033_v3  ;;  %v1062_v40 = vadd.f32 %v263_v4, %v952_v42  ;;  %v266_v60 = vpop.f32.mrf.mxu1 }
  0xc2   :  { %v693_v43 = vpop.eup %692  ;;  %499 = vst [vmem:[%s1181_s3 + $0x18] sm:$0xff] %v479_v33  ;;  %v481_v45 = vmul.f32 %v461_v34, %v984_v1  ;;  %v348_v47 = vmul.f32 %v328_v35, %v1041_v46  ;;  %v1070_v48 = vadd.f32 %v286_v32, %v964_v49  ;;  %v1073_v61 = vadd.f32 %v309_v36, %v967_v51 }
  0xc3   :  { %v695_v50 = vpop.eup %694  ;;  %500 = vst [vmem:[%s1181_s3 + $0x20] sm:$0xff] %v480_v38  ;;  %v442_v52 = vadd.f32 1.0, %v693_v43  ;;  %v406_v53 = vmul.f32 0.7978846, %v386_v56  ;;  %v407_v54 = vmul.f32 0.7978846, %v387_v39  ;;  %v329_v55 = vmul.f32 %v1062_v40, %v1062_v40 }
  0xc4   :  { %v697_v1 = vpop.eup %696  ;;  %501 = vst [vmem:[%s1181_s3 + $0x28] sm:$0xff] %v481_v45  ;;  %v443_v57 = vadd.f32 1.0, %v695_v50  ;;  %v368_v59 = vmul.f32 0.044715, %v348_v47  ;;  %v330_v62 = vmul.f32 %v1070_v48, %v1070_v48  ;;  %v331_v63 = vmul.f32 %v1073_v61, %v1073_v61 }
  0xc5   :  { %v462_v0 = vmul.f32 0.5, %v442_v52  ;;  %v444_v2 = vadd.f32 1.0, %v697_v1  ;;  %700 = vtanh.f32 %v406_v53  ;;  %v349_v4 = vmul.f32 %v329_v55, %v1062_v40 }
  0xc6   :  { %v699_v44 = vpop.eup %698  ;;  %v463_v5 = vmul.f32 0.5, %v443_v57  ;;  %702 = vtanh.f32 %v407_v54  ;;  %v388_v6 = vadd.f32 %v368_v59, %v1041_v46  ;;  %v350_v7 = vmul.f32 %v330_v62, %v1070_v48 }
  0xc7   :  { %v482_v8 = vmul.f32 %v462_v0, %v998_v17  ;;  %v464_v9 = vmul.f32 0.5, %v444_v2  ;;  %v445_v10 = vadd.f32 1.0, %v699_v44  ;;  %v369_v11 = vmul.f32 0.044715, %v349_v4  ;;  %v289_v12 = vpop.f32.mrf.mxu2 }
  0xc8   :  { %v483_v13 = vmul.f32 %v463_v5, %v1003_v22  ;;  %v408_v14 = vmul.f32 0.7978846, %v388_v6  ;;  %v370_v15 = vmul.f32 0.044715, %v350_v7  ;;  %v351_v16 = vmul.f32 %v331_v63, %v1073_v61  ;;  %v312_v18 = vpop.f32.mrf.mxu3  ;;  %v245_v19 = vpop.f32.mrf.mxu0 }
  0xc9   :  { %502 = vst [vmem:[%s1181_s3 + $0x30] sm:$0xff] %v482_v8  ;;  %v484_v20 = vmul.f32 %v464_v9, %v1006_v23  ;;  %v465_v21 = vmul.f32 0.5, %v445_v10  ;;  %v389_v17 = vadd.f32 %v369_v11, %v1062_v40  ;;  %v1099_v24 = vadd.f32 %v243_v37, %v950_v41  ;;  %v268_v25 = vpop.f32.mrf.mxu1 }
  0xca   :  { %503 = vst [vmem:[%s1181_s3 + $0x38] sm:$0xff] %v483_v13  ;;  %704 = vtanh.f32 %v408_v14  ;;  %v390_v22 = vadd.f32 %v370_v15, %v1070_v48  ;;  %v371_v26 = vmul.f32 0.044715, %v351_v16  ;;  %v1106_v27 = vadd.f32 %v266_v60, %v952_v42 }
  0xcb   :  { %v701_v29 = vpop.eup %700  ;;  %504 = vst [vmem:[%s1181_s3 + $0x40] sm:$0xff] %v484_v20  ;;  %v485_v41 = vmul.f32 %v465_v21, %v1012_v28  ;;  %v409_v23 = vmul.f32 0.7978846, %v389_v17  ;;  %v332_v30 = vmul.f32 %v1099_v24, %v1099_v24  ;;  %v1115_v31 = vadd.f32 %v289_v12, %v964_v49 }
  0xcc   :  { %v703_v32 = vpop.eup %702  ;;  %v446_v33 = vadd.f32 1.0, %v701_v29  ;;  %v410_v34 = vmul.f32 0.7978846, %v390_v22  ;;  %v391_v42 = vadd.f32 %v371_v26, %v1073_v61  ;;  %v333_v35 = vmul.f32 %v1106_v27, %v1106_v27 }
  0xcd   :  { %505 = vst [vmem:[%s1181_s3 + $0x48] sm:$0xff] %v485_v41  ;;  %v447_v28 = vadd.f32 1.0, %v703_v32  ;;  %706 = vtanh.f32 %v409_v23  ;;  %v352_v36 = vmul.f32 %v332_v30, %v1099_v24  ;;  %v334_v49 = vmul.f32 %v1115_v31, %v1115_v31 }
  0xce   :  { %v466_v37 = vmul.f32 0.5, %v446_v33  ;;  %708 = vtanh.f32 %v410_v34  ;;  %v411_v38 = vmul.f32 0.7978846, %v391_v42  ;;  %v353_v56 = vmul.f32 %v333_v35, %v1106_v27 }
  0xcf   :  { %v467_v39 = vmul.f32 0.5, %v447_v28  ;;  %v372_v60 = vmul.f32 0.044715, %v352_v36  ;;  %v354_v43 = vmul.f32 %v334_v49, %v1115_v31  ;;  %v1129_v45 = vadd.f32 %v312_v18, %v967_v51  ;;  %v291_v47 = vpop.f32.mrf.mxu2 }
  0xd0   :  { %v705_v50 = vpop.eup %704  ;;  %v486_v52 = vmul.f32 %v466_v37, %v1027_v58  ;;  %710 = vtanh.f32 %v411_v38  ;;  %v373_v53 = vmul.f32 0.044715, %v353_v56  ;;  %v314_v54 = vpop.f32.mrf.mxu3 }
  0xd1   :  { %v487_v55 = vmul.f32 %v467_v39, %v1033_v3  ;;  %v448_v1 = vadd.f32 1.0, %v705_v50  ;;  %v392_v57 = vadd.f32 %v372_v60, %v1099_v24  ;;  %v374_v59 = vmul.f32 0.044715, %v354_v43 }
  0xd2   :  { %506 = vst [vmem:[%s1181_s3 + $0x50] sm:$0xff] %v486_v52  ;;  %v393_v51 = vadd.f32 %v373_v53, %v1106_v27  ;;  %v335_v62 = vmul.f32 %v1129_v45, %v1129_v45 }
  0xd3   :  { %v707_v63 = vpop.eup %706  ;;  %507 = vst [vmem:[%s1181_s3 + $0x58] sm:$0xff] %v487_v55  ;;  %v468_v58 = vmul.f32 0.5, %v448_v1  ;;  %v412_v3 = vmul.f32 0.7978846, %v392_v57  ;;  %v394_v0 = vadd.f32 %v374_v59, %v1115_v31 }
  0xd4   :  { %v709_v2 = vpop.eup %708  ;;  %v449_v4 = vadd.f32 1.0, %v707_v63  ;;  %v413_v44 = vmul.f32 0.7978846, %v393_v51  ;;  %v355_v5 = vmul.f32 %v335_v62, %v1129_v45 }
  0xd5   :  { %v488_v6 = vmul.f32 %v468_v58, %v1041_v46  ;;  %v450_v7 = vadd.f32 1.0, %v709_v2  ;;  %712 = vtanh.f32 %v412_v3  ;;  %v414_v8 = vmul.f32 0.7978846, %v394_v0 }
  0xd6   :  { %v711_v9 = vpop.eup %710  ;;  %v469_v10 = vmul.f32 0.5, %v449_v4  ;;  %714 = vtanh.f32 %v413_v44  ;;  %v375_v11 = vmul.f32 0.044715, %v355_v5 }
  0xd7   :  { %508 = vst [vmem:[%s1181_s3 + $0x60] sm:$0xff] %v488_v6  ;;  %v470_v12 = vmul.f32 0.5, %v450_v7  ;;  %v451_v13 = vadd.f32 1.0, %v711_v9  ;;  %716 = vtanh.f32 %v414_v8 }
  0xd8   :  { %v489_v14 = vmul.f32 %v469_v10, %v1062_v40  ;;  %v395_v15 = vadd.f32 %v375_v11, %v1129_v45 }
  0xd9   :  { %v490_v46 = vmul.f32 %v470_v12, %v1070_v48  ;;  %v471_v16 = vmul.f32 0.5, %v451_v13 }
  0xda   :  { %509 = vst [vmem:[%s1181_s3 + $0x68] sm:$0xff] %v489_v14  ;;  %v415_v18 = vmul.f32 0.7978846, %v395_v15 }
  0xdb   :  { %v713_v19 = vpop.eup %712  ;;  %510 = vst [vmem:[%s1181_s3 + $0x70] sm:$0xff] %v490_v46  ;;  %v491_v20 = vmul.f32 %v471_v16, %v1073_v61 }
  0xdc   :  { %v715_v21 = vpop.eup %714  ;;  %v452_v17 = vadd.f32 1.0, %v713_v19  ;;  %718 = vtanh.f32 %v415_v18 }
  0xdd   :  { %v717_v40 = vpop.eup %716  ;;  %511 = vst [vmem:[%s1181_s3 + $0x78] sm:$0xff] %v491_v20  ;;  %v453_v48 = vadd.f32 1.0, %v715_v21 }
  0xde   :  { %v472_v25 = vmul.f32 0.5, %v452_v17  ;;  %v454_v22 = vadd.f32 1.0, %v717_v40 }
  0xdf   :  { %v473_v26 = vmul.f32 0.5, %v453_v48 }
  0xe0   :  { %v492_v29 = vmul.f32 %v472_v25, %v1099_v24  ;;  %v474_v41 = vmul.f32 0.5, %v454_v22 }
  0xe1   :  { %v493_v23 = vmul.f32 %v473_v26, %v1106_v27 }
  0xe2   :  { %v719_v30 = vpop.eup %718  ;;  %512 = vst [vmem:[%s1181_s3 + $0x80] sm:$0x3] %v492_v29  ;;  %v494_v61 = vmul.f32 %v474_v41, %v1115_v31 }
  0xe3   :  { %513 = vst [vmem:[%s1181_s3 + $0x88] sm:$0x3] %v493_v23  ;;  %v455_v32 = vadd.f32 1.0, %v719_v30 }
  0xe4   :  { %514 = vst [vmem:[%s1181_s3 + $0x90] sm:$0x3] %v494_v61 }
  0xe5   :  { %v475_v24 = vmul.f32 0.5, %v455_v32 }
  0xe7   :  { %v495_v33 = vmul.f32 %v475_v24, %v1129_v45 }
  0xe9   :  { %515 = vst [vmem:[%s1181_s3 + $0x98] sm:$0x3] %v495_v33 }

// kernel: vit_forward.33
= control target key start
LH: loop header
LB: loop body
LE: loop exit
PB: predicated region body
PF: predicated region fallthrough
CT: control target
= control target key end

     0   :  { %s238_s0 = inlined_call_operand.vmem [shape: f32[2,128], index: 0, kind: input, shape index: {}]   ;;  %s239_s1 = inlined_call_operand.vmem [shape: bf16[128,3], index: 1, kind: input, shape index: {}]   ;;  %s240_s2 = inlined_call_operand.vmem [shape: f32[1,3], index: 2, kind: input, shape index: {}]   ;;  %s241_s3 = inlined_call_operand.hbm [shape: f32[2,3], index: 3, kind: output, shape index: {}]  }
   0x1   :  { %v155_v0 = vld [vmem:[%s239_s1 + $0x38] sm:$0xff]  ;;  %v154_v1 = vld [vmem:[%s239_s1 + $0x30] sm:$0xff] }
   0x2   :  { %85 = vmatpush.bf16.msra.mxu0 %v155_v0 }
   0x3   :  { %8 = vsyncpa [#allocation3], 0  ;;  %v153_v2 = vld [vmem:[%s239_s1 + $0x28] sm:$0xff]  ;;  %v152_v3 = vld [vmem:[%s239_s1 + $0x20] sm:$0xff]  ;;  %s184_s5 = smov [#allocation2]   ;;  %s107_s9 = sshll.u32 %s241_s3, 4  ;;  %s108_s9 = int_to_ptr.hbm [resolvable:$true] %s107_s9 }
   0x4   :  { %v151_v4 = vld [vmem:[%s239_s1 + $0x18] sm:$0xff]  ;;  %v150_v5 = vld [vmem:[%s239_s1 + $0x10] sm:$0xff]  ;;  %v149_v6 = vld [vmem:[%s239_s1 + $0x8] sm:$0xff]  ;;  %s105_s6 = sshll.u32 %s184_s5, 4  ;;  %vm98_vm0 = vcmask 17408   ;;  %s106_s6 = int_to_ptr.vmem [resolvable:$true] %s105_s6 }
   0x5   :  { %v148_v7 = vld [vmem:[%s239_s1] sm:$0xff] }
   0x6   :  { %86 = vmatpush.bf16.msra.mxu0 %v154_v1  ;;  %v15_v8 = vld [vmem:[%s238_s0] sm:$0x3] }
   0x7   :  { %v16_v9 = vpack.c.bf16 %v15_v8, %v15_v8  ;;  %v157_v10 = vld [vmem:[%s240_s2] ss:$0 sm:$0xff] }
   0xa   :  { %87 = vmatpush.bf16.msra.mxu0 %v153_v2 }
   0xe   :  { %88 = vmatpush.bf16.msra.mxu0 %v152_v3 }
  0x12   :  { %89 = vmatpush.bf16.msra.mxu0 %v151_v4 }
  0x16   :  { %90 = vmatpush.bf16.msra.mxu0 %v150_v5 }
  0x1a   :  { %91 = vmatpush.bf16.msra.mxu0 %v149_v6 }
  0x1e   :  { %92 = vmatpush.bf16.msra.mxu0 %v148_v7 }
  0x21   :  { %93 = vmatmul.bf16.vlgmr.msra.gmra.mxu0 %v16_v9 }
  0x9e   :  { %v94_v11 = vpop.f32.mrf.mxu0 }
  0x9f   :  { %v95_v12 = vadd.f32 %v157_v10, %v94_v11 }
  0xa1   :  { %99 = vst.msk [vmem:[#allocation2] sm:$0x3] %vm98_vm0, %v95_v12 }
  0xa2   :  { %110 = dma.vmem_to_hbm [thread:$0]  %s106_s6, 32, %s108_s9, [#allocation3]  }
  0xa6   :  { %v96_v13 = vpop.f32.mrf.mxu0 }
  0xa7   :  { %182 = dma.done.wait [#allocation3], 32  }
  0xa8   :  { %183 = vsyncadd [#allocation3], 4294967264 }
  0xa9   :  { %115 = vsyncpa [#allocation3], 1 }

</bundles_post_ra>
